<compile_context>
chip_gen: v7x
topology: tpu7x:2x2x1
jax: 0.10.0
libtpu: 0.0.40
codegen_flags: <defaults>
</compile_context>

<pallas_src>
import functools
import math

import jax
import jax.numpy as jnp
from jax.experimental import pallas as pl
from jax.experimental.pallas import tpu as pltpu


# ---------------------------------------------------------------------------
# shared math helpers (pure jnp; used by the Pallas kernels and the reference)
# ---------------------------------------------------------------------------
def _layernorm(h, g, b, eps=1e-5):
    mu = jnp.mean(h, axis=-1, keepdims=True)
    var = jnp.mean((h - mu) ** 2, axis=-1, keepdims=True)
    return (h - mu) * jax.lax.rsqrt(var + eps) * g + b


def _dot_bf16(a, w):
    """MXU matmul: bf16 operands, f32 accumulation."""
    return jnp.dot(a.astype(jnp.bfloat16), w.astype(jnp.bfloat16),
                   preferred_element_type=jnp.float32)


def _split_heads(t, n_head):
    """(T, H*hd) -> (H, T, hd) via static lane slices + leading-axis stack.
    Runs once per token / per q-tile (never inside the KV loop)."""
    T, D = t.shape
    hd = D // n_head
    return jnp.stack([t[:, h * hd:(h + 1) * hd] for h in range(n_head)], axis=0)


def _merge_heads(t):
    """(H, T, hd) -> (T, H*hd)."""
    return jnp.concatenate([t[h] for h in range(t.shape[0])], axis=-1)


# ---------------------------------------------------------------------------
# kernel 1: LayerNorm + fused self-attn QKV projection (tiled over (B, S))
# ---------------------------------------------------------------------------
def _qkv_proj_kernel(x_ref, vec_ref, w_qkv_ref, q_ref, k_ref, v_ref, *, n_head):
    D = x_ref.shape[-1]
    ln_g = vec_ref[0:1, :D]
    ln_b = vec_ref[1:2, :D]
    b_qkv = vec_ref[6:7, :3 * D]                  # q part pre-scaled by 1/sqrt(hd)
    xn = _layernorm(x_ref[0], ln_g, ln_b)
    qkv = _dot_bf16(xn, w_qkv_ref[...]) + b_qkv   # (tq, 3D) f32
    q_ref[0] = _split_heads(qkv[:, 0:D], n_head).astype(jnp.bfloat16)
    k_ref[0] = _split_heads(qkv[:, D:2 * D], n_head).astype(jnp.bfloat16)
    v_ref[0] = _split_heads(qkv[:, 2 * D:3 * D], n_head).astype(jnp.bfloat16)


# ---------------------------------------------------------------------------
# kernel 2: cross-attn K/V projection, once per batch element (hoisted)
# ---------------------------------------------------------------------------
def _cross_kv_kernel(ctx_ref, vec_ref, w_kv_ref, k_ref, v_ref, *, n_head):
    D2 = w_kv_ref.shape[-1]
    D = D2 // 2
    b_kv = vec_ref[9:10, :D2]
    kv = _dot_bf16(ctx_ref[0], w_kv_ref[...]) + b_kv   # (Sc, 2D) f32
    k_ref[0] = _split_heads(kv[:, 0:D], n_head).astype(jnp.bfloat16)
    v_ref[0] = _split_heads(kv[:, D:2 * D], n_head).astype(jnp.bfloat16)


# ---------------------------------------------------------------------------
# kernel 3: flash self-attn + cross-attn + FFN over (batch, q-tile, kv-tile)
# ---------------------------------------------------------------------------
def _block_kernel(x_ref, q_ref, k_ref, v_ref, kc_ref, vc_ref, vec_ref,
                  wo_s_ref, wq_c_ref, wo_c_ref, w1_ref, w2_ref,
                  out_ref, m_sc, l_sc, acc_sc, *, n_head):
    kv_i = pl.program_id(2)

    @pl.when(kv_i == 0)
    def _():
        m_sc[...] = jnp.full_like(m_sc, -jnp.inf)
        l_sc[...] = jnp.zeros_like(l_sc)
        acc_sc[...] = jnp.zeros_like(acc_sc)

    # ---- one KV tile of self-attention (online softmax) ----
    qh = q_ref[0]                                   # (H, tq, hd) bf16, scale folded
    kh = k_ref[0]                                   # (H, tk, hd) bf16
    vh = v_ref[0]
    s = jnp.einsum('hqd,hkd->hqk', qh, kh,
                   preferred_element_type=jnp.float32)          # (H, tq, tk) f32
    m_prev = m_sc[...]
    m_new = jnp.maximum(m_prev, jnp.max(s, axis=-1, keepdims=True))
    alpha = jnp.exp(m_prev - m_new)
    p = jnp.exp(s - m_new)
    l_sc[...] = alpha * l_sc[...] + jnp.sum(p, axis=-1, keepdims=True)
    acc_sc[...] = alpha * acc_sc[...] + jnp.einsum(
        'hqk,hkd->hqd', p.astype(jnp.bfloat16), vh,
        preferred_element_type=jnp.float32)
    m_sc[...] = m_new

    # ---- epilogue on the last KV tile: finish attn, cross-attn, FFN ----
    @pl.when(kv_i == pl.num_programs(2) - 1)
    def _():
        D = x_ref.shape[-1]
        ln2_g = vec_ref[2:3, :D]
        ln2_b = vec_ref[3:4, :D]
        ln3_g = vec_ref[4:5, :D]
        ln3_b = vec_ref[5:6, :D]
        bo_s = vec_ref[7:8, :D]
        bq_c = vec_ref[8:9, :D]                      # pre-scaled by 1/sqrt(hd)
        bo_c = vec_ref[10:11, :D]
        b1 = vec_ref[11:12, :4 * D]
        b2 = vec_ref[12:13, :D]

        # self-attention output projection + residual
        o = acc_sc[...] * pl.reciprocal(l_sc[...], approx=True)   # (H,tq,hd) f32
        h = x_ref[0] + _dot_bf16(_merge_heads(o), wo_s_ref[...]) + bo_s

        # cross-attention (context K/V precomputed per batch; Sc is small)
        xn = _layernorm(h, ln2_g, ln2_b)
        qc = _split_heads(_dot_bf16(xn, wq_c_ref[...]) + bq_c,
                          n_head).astype(jnp.bfloat16)             # (H,tq,hd)
        sc = jnp.einsum('hqd,hkd->hqk', qc, kc_ref[0],
                        preferred_element_type=jnp.float32)        # (H,tq,Sc)
        sc = sc - jnp.max(sc, axis=-1, keepdims=True)
        pc = jnp.exp(sc)
        pc = pc * pl.reciprocal(jnp.sum(pc, axis=-1, keepdims=True), approx=True)
        oc = jnp.einsum('hqk,hkd->hqd', pc.astype(jnp.bfloat16), vc_ref[0],
                        preferred_element_type=jnp.float32)
        h = h + _dot_bf16(_merge_heads(oc), wo_c_ref[...]) + bo_c

        # feed-forward
        xn = _layernorm(h, ln3_g, ln3_b)
        f = _dot_bf16(xn, w1_ref[...]) + b1
        f = jax.nn.gelu(f, approximate=True)   # tanh GELU (EUP); PyTorch uses erf
        f = _dot_bf16(f, w2_ref[...]) + b2
        # TODO(synk): dropout omitted (module evaluated in eval/inference mode).
        out_ref[0] = (h + f).astype(out_ref.dtype)


# ---------------------------------------------------------------------------
# wrapper
# ---------------------------------------------------------------------------
def basic_transformer_block(x, context, params, n_head, *, q_tile=None, kv_tile=None):
    """x: (B, C, H, W) float32;  context: (B, Sc, Cd) float32."""
    B, C, H_sp, W_sp = x.shape
    S = H_sp * W_sp
    D = C
    hd = D // n_head
    Sc, Cd = context.shape[1], context.shape[2]
    vecs, w_qkv_s, wo_s, wq_c, w_kv_c, wo_c, w1, w2 = params

    def pick_tile(requested):
        if requested is not None:
            assert S % requested == 0
            return requested
        # 256-multiples feed the v6e/v7x 256x256 MXU; fall back for small S.
        for t in (256, 128, 64, 32, 16, 8):
            if S % t == 0:
                return t
        return S

    tq = pick_tile(q_tile)
    tk = pick_tile(kv_tile)
    n_qt = S // tq
    n_kt = S // tk

    # One-time layout change in the wrapper (single fused XLA transpose) so the
    # kernels never materialize a (C,S)<->(S,C) transpose in VMEM.
    x_seq = jnp.transpose(x.reshape(B, C, S), (0, 2, 1))          # (B, S, D)

    def full(a):
        return pl.BlockSpec(a.shape, lambda *_: (0,) * a.ndim)

    def cp(sem):
        # Explicit VMEM budget: fits v7x's 64 MiB physical VMEM with DMA
        # headroom; bump toward ~100 MiB on v5e/v6e for larger tiles.
        return pltpu.CompilerParams(dimension_semantics=sem,
                                    vmem_limit_bytes=56 * 1024 * 1024)

    # --- 1) LayerNorm + fused QKV projection, head-major bf16 outputs ---
    q, k, v = pl.pallas_call(
        functools.partial(_qkv_proj_kernel, n_head=n_head),
        out_shape=tuple(jax.ShapeDtypeStruct((B, n_head, S, hd), jnp.bfloat16)
                        for _ in range(3)),
        grid=(B, n_qt),
        in_specs=[
            pl.BlockSpec((1, tq, D), lambda b, s: (b, s, 0)),
            full(vecs), full(w_qkv_s),
        ],
        out_specs=tuple(pl.BlockSpec((1, n_head, tq, hd),
                                     lambda b, s: (b, 0, s, 0))
                        for _ in range(3)),
        compiler_params=cp(("parallel", "parallel")),
    )(x_seq, vecs, w_qkv_s)

    # --- 2) cross-attention K/V projection, once per batch element ---
    kc, vc = pl.pallas_call(
        functools.partial(_cross_kv_kernel, n_head=n_head),
        out_shape=tuple(jax.ShapeDtypeStruct((B, n_head, Sc, hd), jnp.bfloat16)
                        for _ in range(2)),
        grid=(B,),
        in_specs=[
            pl.BlockSpec((1, Sc, Cd), lambda b: (b, 0, 0)),
            full(vecs), full(w_kv_c),
        ],
        out_specs=tuple(pl.BlockSpec((1, n_head, Sc, hd),
                                     lambda b: (b, 0, 0, 0))
                        for _ in range(2)),
        compiler_params=cp(("parallel",)),
    )(context, vecs, w_kv_c)

    # --- 3) flash self-attn + cross-attn + FFN, grid (B, q-tiles, kv-tiles) ---
    out_seq = pl.pallas_call(
        functools.partial(_block_kernel, n_head=n_head),
        out_shape=jax.ShapeDtypeStruct((B, S, D), x.dtype),
        grid=(B, n_qt, n_kt),
        in_specs=[
            pl.BlockSpec((1, tq, D), lambda b, s, t: (b, s, 0)),
            pl.BlockSpec((1, n_head, tq, hd), lambda b, s, t: (b, 0, s, 0)),
            pl.BlockSpec((1, n_head, tk, hd), lambda b, s, t: (b, 0, t, 0)),
            pl.BlockSpec((1, n_head, tk, hd), lambda b, s, t: (b, 0, t, 0)),
            pl.BlockSpec((1, n_head, Sc, hd), lambda b, s, t: (b, 0, 0, 0)),
            pl.BlockSpec((1, n_head, Sc, hd), lambda b, s, t: (b, 0, 0, 0)),
            full(vecs), full(wo_s), full(wq_c), full(wo_c), full(w1), full(w2),
        ],
        out_specs=pl.BlockSpec((1, tq, D), lambda b, s, t: (b, s, 0)),
        scratch_shapes=[
            pltpu.VMEM((n_head, tq, 1), jnp.float32),    # running max
            pltpu.VMEM((n_head, tq, 1), jnp.float32),    # running sum
            pltpu.VMEM((n_head, tq, hd), jnp.float32),   # running PV accumulator
        ],
        compiler_params=cp(("parallel", "parallel", "arbitrary")),
    )(x_seq, q, k, v, kc, vc, vecs, wo_s, wq_c, wo_c, w1, w2)

    return jnp.transpose(out_seq, (0, 2, 1)).reshape(B, C, H_sp, W_sp)


# ---------------------------------------------------------------------------
# parameter construction (PyTorch shapes -> packed kernel layout)
# ---------------------------------------------------------------------------
def make_params(key, dim, context_dim):
    D, Cd = dim, context_dim
    ks = list(jax.random.split(key, 20))

    def nrm(k, shape, scale):
        return (scale * jax.random.normal(k, shape)).astype(jnp.float32)

    return {
        "ln1_w": 1.0 + nrm(ks[0], (D,), 0.02), "ln1_b": nrm(ks[1], (D,), 0.02),
        "ln2_w": 1.0 + nrm(ks[2], (D,), 0.02), "ln2_b": nrm(ks[3], (D,), 0.02),
        "ln3_w": 1.0 + nrm(ks[4], (D,), 0.02), "ln3_b": nrm(ks[5], (D,), 0.02),
        # self-attn: in_proj (3D, D), out_proj (D, D)   (PyTorch layout)
        "sa_in_w": nrm(ks[6], (3 * D, D), 0.1), "sa_in_b": nrm(ks[7], (3 * D,), 0.02),
        "sa_out_w": nrm(ks[8], (D, D), 0.1), "sa_out_b": nrm(ks[9], (D,), 0.02),
        # cross-attn: separate q/k/v projections (kdim != embed_dim)
        "ca_q_w": nrm(ks[10], (D, D), 0.1),
        "ca_k_w": nrm(ks[11], (D, Cd), 0.1),
        "ca_v_w": nrm(ks[12], (D, Cd), 0.1),
        "ca_in_b": nrm(ks[13], (3 * D,), 0.02),
        "ca_out_w": nrm(ks[14], (D, D), 0.1), "ca_out_b": nrm(ks[15], (D,), 0.02),
        # feed-forward
        "ff1_w": nrm(ks[16], (4 * D, D), 0.1), "ff1_b": nrm(ks[17], (4 * D,), 0.02),
        "ff2_w": nrm(ks[18], (D, 4 * D), 0.1), "ff2_b": nrm(ks[19], (D,), 0.02),
    }


def pack_params(pt, dim, n_head):
    """PyTorch-layout params -> packed, right-multiplied kernel layout with the
    1/sqrt(hd) query scale folded into the Q projections (done once offline)."""
    D = dim
    w4 = 4 * D
    scale = 1.0 / math.sqrt(D // n_head)

    def pad_row(v):
        v = jnp.asarray(v, jnp.float32).reshape(-1)
        return jnp.pad(v, (0, w4 - v.shape[0]))

    sa_in_b = pt["sa_in_b"].at[:D].multiply(scale)   # scale folded into q bias
    ca_q_b = pt["ca_in_b"][:D] * scale

    rows = [
        pt["ln1_w"], pt["ln1_b"], pt["ln2_w"], pt["ln2_b"],
        pt["ln3_w"], pt["ln3_b"],
        sa_in_b,                            # (3D,) fused q|k|v bias (q scaled)
        pt["sa_out_b"],
        ca_q_b,                             # cross-attn q bias (scaled)
        pt["ca_in_b"][D:],                  # (2D,) fused k|v bias
        pt["ca_out_b"],
        pt["ff1_b"],                        # (4D,)
        pt["ff2_b"],
    ]
    vecs = jnp.stack([pad_row(r) for r in rows], axis=0)        # (13, 4D) f32

    bf = lambda a: jnp.asarray(a, jnp.bfloat16)
    sa_in_w = pt["sa_in_w"].at[:D].multiply(scale)   # scale folded into Wq rows
    w_qkv_s = bf(sa_in_w.T)                                     # (D, 3D) q|k|v
    wo_s = bf(pt["sa_out_w"].T)                                 # (D, D)
    wq_c = bf(pt["ca_q_w"].T * scale)                           # (D, D)
    w_kv_c = bf(jnp.concatenate([pt["ca_k_w"].T, pt["ca_v_w"].T], axis=1))  # (Cd, 2D)
    wo_c = bf(pt["ca_out_w"].T)                                 # (D, D)
    w1 = bf(pt["ff1_w"].T)                                      # (D, 4D)
    w2 = bf(pt["ff2_w"].T)                                      # (4D, D)
    return (vecs, w_qkv_s, wo_s, wq_c, w_kv_c, wo_c, w1, w2)


# ---------------------------------------------------------------------------
# pure-JAX reference (same math, no Pallas / no tiling) for a sanity check
# ---------------------------------------------------------------------------
def reference(x, context, params, n_head):
    B, C, H_sp, W_sp = x.shape
    S = H_sp * W_sp
    D = C
    vecs, w_qkv_s, wo_s, wq_c, w_kv_c, wo_c, w1, w2 = params

    ln1_g, ln1_b = vecs[0, :D], vecs[1, :D]
    ln2_g, ln2_b = vecs[2, :D], vecs[3, :D]
    ln3_g, ln3_b = vecs[4, :D], vecs[5, :D]
    b_qkv = vecs[6, :3 * D]
    bo_s = vecs[7, :D]
    bq_c = vecs[8, :D]
    b_kv = vecs[9, :2 * D]
    bo_c = vecs[10, :D]
    b1 = vecs[11, :4 * D]
    b2 = vecs[12, :D]

    def attn(q, k, v, wo, bo):
        qh = _split_heads(q.astype(jnp.bfloat16), n_head)
        kh = _split_heads(k.astype(jnp.bfloat16), n_head)
        vh = _split_heads(v.astype(jnp.bfloat16), n_head)
        s = jnp.einsum('hqd,hkd->hqk', qh, kh, preferred_element_type=jnp.float32)
        p = jax.nn.softmax(s, axis=-1)
        o = jnp.einsum('hqk,hkd->hqd', p.astype(jnp.bfloat16), vh,
                       preferred_element_type=jnp.float32)
        return _dot_bf16(_merge_heads(o), wo) + bo

    def one_batch(x_seq, ctx):
        h = x_seq
        xn = _layernorm(h, ln1_g, ln1_b)
        qkv = _dot_bf16(xn, w_qkv_s) + b_qkv
        h = h + attn(qkv[:, :D], qkv[:, D:2 * D], qkv[:, 2 * D:], wo_s, bo_s)
        xn = _layernorm(h, ln2_g, ln2_b)
        qc = _dot_bf16(xn, wq_c) + bq_c
        kv = _dot_bf16(ctx, w_kv_c) + b_kv
        h = h + attn(qc, kv[:, :D], kv[:, D:], wo_c, bo_c)
        xn = _layernorm(h, ln3_g, ln3_b)
        f = _dot_bf16(xn, w1) + b1
        f = jax.nn.gelu(f, approximate=True)
        f = _dot_bf16(f, w2) + b2
        return h + f

    x_seq = jnp.transpose(x.reshape(B, C, S), (0, 2, 1))
    out_seq = jax.vmap(one_batch)(x_seq, context)
    return jnp.transpose(out_seq, (0, 2, 1)).reshape(B, C, H_sp, W_sp)


if __name__ == "__main__":
    B, C, H, W = 2, 128, 16, 16        # dim = C = 128, S = 256 tokens
    n_head = 4                          # head_dim = 32
    Sc, Cd = 16, 64                     # context: (B, 16, 64)

    key = jax.random.PRNGKey(0)
    k_x, k_ctx, k_p = jax.random.split(key, 3)
    x = jax.random.normal(k_x, (B, C, H, W), dtype=jnp.float32)
    context = jax.random.normal(k_ctx, (B, Sc, Cd), dtype=jnp.float32)

    pt_params = make_params(k_p, C, Cd)
    params = pack_params(pt_params, C, n_head)

    # 128-tiles here to exercise the multi-tile / online-softmax path at this
    # small S; use 256 tiles (MXU-native on v6e/v7x) for realistic shapes.
    out = basic_transformer_block(x, context, params, n_head,
                                  q_tile=128, kv_tile=128)
    out = jax.block_until_ready(out)

    ref = jax.block_until_ready(reference(x, context, params, n_head))
    assert out.shape == (B, C, H, W)
    max_err = float(jnp.max(jnp.abs(out - ref)))
    assert jnp.allclose(out, ref, atol=3e-2, rtol=3e-2), (
        f"mismatch vs reference: max abs err = {max_err}")

    print("KERNEL_OK")
</pallas_src>

<mosaic_0001>
module attributes {stable_mosaic.version = 11 : i64} {
  func.func @_qkv_proj_kernel(%arg0: i32, %arg1: i32, %arg2: memref<1x128x128xf32, #tpu.memory_space<vmem>>, %arg3: memref<13x512xf32, #tpu.memory_space<vmem>>, %arg4: memref<128x384xbf16, #tpu.memory_space<vmem>>, %arg5: memref<1x4x128x32xbf16, #tpu.memory_space<vmem>>, %arg6: memref<1x4x128x32xbf16, #tpu.memory_space<vmem>>, %arg7: memref<1x4x128x32xbf16, #tpu.memory_space<vmem>>) attributes {dimension_semantics = [#tpu.dimension_semantics<parallel>, #tpu.dimension_semantics<parallel>], iteration_bounds = array<i64: 2, 2>, scalar_prefetch = 0 : i64, scratch_operands = 0 : i64, tpu.core_type = #tpu.core_type<tc>, window_params = [{transform_indices = @transform_0, window_bounds = array<i64: 1, 128, 128>}, {pipeline_mode = #tpu.pipeline_mode<synchronous>, transform_indices = @transform_1, window_bounds = array<i64: 13, 512>}, {pipeline_mode = #tpu.pipeline_mode<synchronous>, transform_indices = @transform_2, window_bounds = array<i64: 128, 384>}, {transform_indices = @transform_3, window_bounds = array<i64: 1, 4, 128, 32>}, {transform_indices = @transform_4, window_bounds = array<i64: 1, 4, 128, 32>}, {transform_indices = @transform_5, window_bounds = array<i64: 1, 4, 128, 32>}]} {
    %c0 = arith.constant 0 : index
    %c0_0 = arith.constant 0 : index
    %0 = vector.load %arg3[%c0, %c0_0] : memref<13x512xf32, #tpu.memory_space<vmem>>, vector<1x128xf32>
    %c1 = arith.constant 1 : index
    %c0_1 = arith.constant 0 : index
    %1 = vector.load %arg3[%c1, %c0_1] : memref<13x512xf32, #tpu.memory_space<vmem>>, vector<1x128xf32>
    %c6 = arith.constant 6 : index
    %c0_2 = arith.constant 0 : index
    %2 = vector.load %arg3[%c6, %c0_2] : memref<13x512xf32, #tpu.memory_space<vmem>>, vector<1x384xf32>
    %c0_3 = arith.constant 0 : index
    %c0_4 = arith.constant 0 : index
    %c0_5 = arith.constant 0 : index
    %3 = vector.load %arg2[%c0_3, %c0_4, %c0_5] : memref<1x128x128xf32, #tpu.memory_space<vmem>>, vector<1x128x128xf32>
    %4 = vector.shape_cast %3 : vector<1x128x128xf32> to vector<128x128xf32>
    %cst = arith.constant dense<0.000000e+00> : vector<128xf32>
    %5 = vector.multi_reduction <add>, %4, %cst [1] : vector<128x128xf32> to vector<128xf32>
    %6 = vector.shape_cast %5 : vector<128xf32> to vector<128x1xf32>
    %cst_6 = arith.constant 1.280000e+02 : f32
    %7 = vector.broadcast %cst_6 : f32 to vector<128x1xf32>
    %8 = arith.divf %6, %7 : vector<128x1xf32>
    %9 = vector.broadcast %8 : vector<128x1xf32> to vector<128x128xf32>
    %10 = arith.subf %4, %9 : vector<128x128xf32>
    %11 = arith.mulf %10, %10 : vector<128x128xf32>
    %cst_7 = arith.constant dense<0.000000e+00> : vector<128xf32>
    %12 = vector.multi_reduction <add>, %11, %cst_7 [1] : vector<128x128xf32> to vector<128xf32>
    %13 = vector.shape_cast %12 : vector<128xf32> to vector<128x1xf32>
    %cst_8 = arith.constant 1.280000e+02 : f32
    %14 = vector.broadcast %cst_8 : f32 to vector<128x1xf32>
    %15 = arith.divf %13, %14 : vector<128x1xf32>
    %16 = vector.broadcast %8 : vector<128x1xf32> to vector<128x128xf32>
    %17 = arith.subf %4, %16 : vector<128x128xf32>
    %cst_9 = arith.constant 9.99999974E-6 : f32
    %18 = vector.broadcast %cst_9 : f32 to vector<128x1xf32>
    %19 = arith.addf %15, %18 : vector<128x1xf32>
    %20 = math.rsqrt %19 : vector<128x1xf32>
    %21 = vector.broadcast %20 : vector<128x1xf32> to vector<128x128xf32>
    %22 = arith.mulf %17, %21 : vector<128x128xf32>
    %23 = vector.broadcast %0 : vector<1x128xf32> to vector<128x128xf32>
    %24 = arith.mulf %22, %23 : vector<128x128xf32>
    %25 = vector.broadcast %1 : vector<1x128xf32> to vector<128x128xf32>
    %26 = arith.addf %24, %25 : vector<128x128xf32>
    %c0_10 = arith.constant 0 : index
    %c0_11 = arith.constant 0 : index
    %27 = vector.load %arg4[%c0_10, %c0_11] : memref<128x384xbf16, #tpu.memory_space<vmem>>, vector<128x384xbf16>
    %28 = arith.truncf %26 : vector<128x128xf32> to vector<128x128xbf16>
    %cst_12 = arith.constant dense<0.000000e+00> : vector<128x384xf32>
    %29 = tpu.matmul %28, %27, %cst_12 {dimension_numbers = #tpu.dot_dimension_numbers<[1], [0], [0], [1], [0, 0, 1, 1], [], []>} : vector<128x128xbf16>, vector<128x384xbf16>, vector<128x384xf32> -> vector<128x384xf32>
    %30 = vector.broadcast %2 : vector<1x384xf32> to vector<128x384xf32>
    %31 = arith.addf %29, %30 : vector<128x384xf32>
    %32 = vector.extract_strided_slice %31 {offsets = [0, 0], sizes = [128, 128], strides = [1, 1]} : vector<128x384xf32> to vector<128x128xf32>
    %33 = vector.extract_strided_slice %32 {offsets = [0, 0], sizes = [128, 32], strides = [1, 1]} : vector<128x128xf32> to vector<128x32xf32>
    %34 = vector.extract_strided_slice %32 {offsets = [0, 32], sizes = [128, 32], strides = [1, 1]} : vector<128x128xf32> to vector<128x32xf32>
    %35 = vector.extract_strided_slice %32 {offsets = [0, 64], sizes = [128, 32], strides = [1, 1]} : vector<128x128xf32> to vector<128x32xf32>
    %36 = vector.extract_strided_slice %32 {offsets = [0, 96], sizes = [128, 32], strides = [1, 1]} : vector<128x128xf32> to vector<128x32xf32>
    %37 = vector.shape_cast %33 : vector<128x32xf32> to vector<1x128x32xf32>
    %38 = vector.shape_cast %34 : vector<128x32xf32> to vector<1x128x32xf32>
    %39 = vector.shape_cast %35 : vector<128x32xf32> to vector<1x128x32xf32>
    %40 = vector.shape_cast %36 : vector<128x32xf32> to vector<1x128x32xf32>
    %41 = tpu.concatenate %37, %38, %39, %40 in 0 : vector<1x128x32xf32>, vector<1x128x32xf32>, vector<1x128x32xf32>, vector<1x128x32xf32> -> vector<4x128x32xf32>
    %42 = arith.truncf %41 : vector<4x128x32xf32> to vector<4x128x32xbf16>
    %c0_13 = arith.constant 0 : index
    %c0_14 = arith.constant 0 : index
    %c0_15 = arith.constant 0 : index
    %c0_16 = arith.constant 0 : index
    %43 = vector.load %arg5[%c0_13, %c0_14, %c0_15, %c0_16] : memref<1x4x128x32xbf16, #tpu.memory_space<vmem>>, vector<1x4x128x32xbf16>
    %44 = vector.shape_cast %43 : vector<1x4x128x32xbf16> to vector<4x128x32xbf16>
    %45 = vector.shape_cast %42 : vector<4x128x32xbf16> to vector<1x4x128x32xbf16>
    tpu.vector_store %arg5[%c0_13, %c0_14, %c0_15, %c0_16], %45 {strides = array<i32>} : memref<1x4x128x32xbf16, #tpu.memory_space<vmem>>, vector<1x4x128x32xbf16>,
    %46 = vector.extract_strided_slice %31 {offsets = [0, 128], sizes = [128, 128], strides = [1, 1]} : vector<128x384xf32> to vector<128x128xf32>
    %47 = vector.extract_strided_slice %46 {offsets = [0, 0], sizes = [128, 32], strides = [1, 1]} : vector<128x128xf32> to vector<128x32xf32>
    %48 = vector.extract_strided_slice %46 {offsets = [0, 32], sizes = [128, 32], strides = [1, 1]} : vector<128x128xf32> to vector<128x32xf32>
    %49 = vector.extract_strided_slice %46 {offsets = [0, 64], sizes = [128, 32], strides = [1, 1]} : vector<128x128xf32> to vector<128x32xf32>
    %50 = vector.extract_strided_slice %46 {offsets = [0, 96], sizes = [128, 32], strides = [1, 1]} : vector<128x128xf32> to vector<128x32xf32>
    %51 = vector.shape_cast %47 : vector<128x32xf32> to vector<1x128x32xf32>
    %52 = vector.shape_cast %48 : vector<128x32xf32> to vector<1x128x32xf32>
    %53 = vector.shape_cast %49 : vector<128x32xf32> to vector<1x128x32xf32>
    %54 = vector.shape_cast %50 : vector<128x32xf32> to vector<1x128x32xf32>
    %55 = tpu.concatenate %51, %52, %53, %54 in 0 : vector<1x128x32xf32>, vector<1x128x32xf32>, vector<1x128x32xf32>, vector<1x128x32xf32> -> vector<4x128x32xf32>
    %56 = arith.truncf %55 : vector<4x128x32xf32> to vector<4x128x32xbf16>
    %c0_17 = arith.constant 0 : index
    %c0_18 = arith.constant 0 : index
    %c0_19 = arith.constant 0 : index
    %c0_20 = arith.constant 0 : index
    %57 = vector.load %arg6[%c0_17, %c0_18, %c0_19, %c0_20] : memref<1x4x128x32xbf16, #tpu.memory_space<vmem>>, vector<1x4x128x32xbf16>
    %58 = vector.shape_cast %57 : vector<1x4x128x32xbf16> to vector<4x128x32xbf16>
    %59 = vector.shape_cast %56 : vector<4x128x32xbf16> to vector<1x4x128x32xbf16>
    tpu.vector_store %arg6[%c0_17, %c0_18, %c0_19, %c0_20], %59 {strides = array<i32>} : memref<1x4x128x32xbf16, #tpu.memory_space<vmem>>, vector<1x4x128x32xbf16>,
    %60 = vector.extract_strided_slice %31 {offsets = [0, 256], sizes = [128, 128], strides = [1, 1]} : vector<128x384xf32> to vector<128x128xf32>
    %61 = vector.extract_strided_slice %60 {offsets = [0, 0], sizes = [128, 32], strides = [1, 1]} : vector<128x128xf32> to vector<128x32xf32>
    %62 = vector.extract_strided_slice %60 {offsets = [0, 32], sizes = [128, 32], strides = [1, 1]} : vector<128x128xf32> to vector<128x32xf32>
    %63 = vector.extract_strided_slice %60 {offsets = [0, 64], sizes = [128, 32], strides = [1, 1]} : vector<128x128xf32> to vector<128x32xf32>
    %64 = vector.extract_strided_slice %60 {offsets = [0, 96], sizes = [128, 32], strides = [1, 1]} : vector<128x128xf32> to vector<128x32xf32>
    %65 = vector.shape_cast %61 : vector<128x32xf32> to vector<1x128x32xf32>
    %66 = vector.shape_cast %62 : vector<128x32xf32> to vector<1x128x32xf32>
    %67 = vector.shape_cast %63 : vector<128x32xf32> to vector<1x128x32xf32>
    %68 = vector.shape_cast %64 : vector<128x32xf32> to vector<1x128x32xf32>
    %69 = tpu.concatenate %65, %66, %67, %68 in 0 : vector<1x128x32xf32>, vector<1x128x32xf32>, vector<1x128x32xf32>, vector<1x128x32xf32> -> vector<4x128x32xf32>
    %70 = arith.truncf %69 : vector<4x128x32xf32> to vector<4x128x32xbf16>
    %c0_21 = arith.constant 0 : index
    %c0_22 = arith.constant 0 : index
    %c0_23 = arith.constant 0 : index
    %c0_24 = arith.constant 0 : index
    %71 = vector.load %arg7[%c0_21, %c0_22, %c0_23, %c0_24] : memref<1x4x128x32xbf16, #tpu.memory_space<vmem>>, vector<1x4x128x32xbf16>
    %72 = vector.shape_cast %71 : vector<1x4x128x32xbf16> to vector<4x128x32xbf16>
    %73 = vector.shape_cast %70 : vector<4x128x32xbf16> to vector<1x4x128x32xbf16>
    tpu.vector_store %arg7[%c0_21, %c0_22, %c0_23, %c0_24], %73 {strides = array<i32>} : memref<1x4x128x32xbf16, #tpu.memory_space<vmem>>, vector<1x4x128x32xbf16>,
    return
  }
  func.func @transform_0(%arg0: i32, %arg1: i32) -> (i32, i32, i32) {
    %c0_i32 = arith.constant 0 : i32
    %c0_i32_0 = arith.constant 0 : i32
    return %arg0, %arg1, %c0_i32 : i32, i32, i32
  }
  func.func @transform_1(%arg0: i32, %arg1: i32) -> (i32, i32) {
    %c0_i32 = arith.constant 0 : i32
    %c0_i32_0 = arith.constant 0 : i32
    %c0_i32_1 = arith.constant 0 : i32
    return %c0_i32, %c0_i32_0 : i32, i32
  }
  func.func @transform_2(%arg0: i32, %arg1: i32) -> (i32, i32) {
    %c0_i32 = arith.constant 0 : i32
    %c0_i32_0 = arith.constant 0 : i32
    %c0_i32_1 = arith.constant 0 : i32
    return %c0_i32, %c0_i32_0 : i32, i32
  }
  func.func @transform_3(%arg0: i32, %arg1: i32) -> (i32, i32, i32, i32) {
    %c0_i32 = arith.constant 0 : i32
    %c0_i32_0 = arith.constant 0 : i32
    %c0_i32_1 = arith.constant 0 : i32
    return %arg0, %c0_i32, %arg1, %c0_i32_0 : i32, i32, i32, i32
  }
  func.func @transform_4(%arg0: i32, %arg1: i32) -> (i32, i32, i32, i32) {
    %c0_i32 = arith.constant 0 : i32
    %c0_i32_0 = arith.constant 0 : i32
    %c0_i32_1 = arith.constant 0 : i32
    return %arg0, %c0_i32, %arg1, %c0_i32_0 : i32, i32, i32, i32
  }
  func.func @transform_5(%arg0: i32, %arg1: i32) -> (i32, i32, i32, i32) {
    %c0_i32 = arith.constant 0 : i32
    %c0_i32_0 = arith.constant 0 : i32
    %c0_i32_1 = arith.constant 0 : i32
    return %arg0, %c0_i32, %arg1, %c0_i32_0 : i32, i32, i32, i32
  }
}

</mosaic_0001>

<bundles_post_ra>
// kernel: tpu_custom_call.1
= control target key start
LH: loop header
LB: loop body
LE: loop exit
PB: predicated region body
PF: predicated region fallthrough
CT: control target
= control target key end

     0   :  { %s5915_s0 = inlined_call_operand.hbm [shape: f32[2,256,128], index: 0, kind: input, shape index: {}]   ;;  %s5916_s1 = inlined_call_operand.hbm [shape: f32[13,512], index: 1, kind: input, shape index: {}]   ;;  %s5917_s2 = inlined_call_operand.hbm [shape: bf16[128,384], index: 2, kind: input, shape index: {}]   ;;  %s5918_s3 = inlined_call_operand.vmem [shape: bf16[2,4,256,32], index: 3, kind: output, shape index: {0}]   ;;  %s5919_s4 = inlined_call_operand.vmem [shape: bf16[2,4,256,32], index: 4, kind: output, shape index: {1}]   ;;  %s5920_s5 = inlined_call_operand.vmem [shape: bf16[2,4,256,32], index: 5, kind: output, shape index: {2}]  }
   0x1   :  { %5928 = sst [smem:[#allocation15_spill]] %s5916_s1 }
   0x2   :  { %5929 = sst [smem:[#allocation16_spill]] %s5917_s2 }
   0x3   :  { %11 = vsyncpa [#allocation3], 0 }
   0x4   :  { %13 = vsyncpa [#allocation3 + $0x1], 0 }
   0x5   :  { %14 = vsyncpa [#allocation5], 0  ;;  %s4655_s18 = smov 0   ;;  %s4657_s19 = smov 0  }
   0x6   :  { %s4659_s20 = smov 0   ;;  %s4661_s21 = smov 0  }
   0x7   :  { %s4663_s22 = smov 0   ;;  %s4665_s23 = smov 0  }
   0x8   :  { %s4667_s24 = smov 0   ;;  %s4669_s25 = smov 0  }
   0x9 LB: > { %5930 = sst [smem:[#allocation12_spill]] %s4602_s23  ;;  %s3441_s26 = sadd.s32 4294967295, %s4610_s25   ;;  %s4610_s25 = sphi %s4669_s25, %s20_s25   ;;  %s4606_s24 = sphi %s4667_s24, %s5954_s24   ;;  %s4602_s23 = sphi %s4665_s23, %s5948_s23   ;;  %s4598_s22 = sphi %s4663_s22, %s5953_s22   ;;  %s4594_s21 = sphi %s4661_s21, %s5947_s21   ;;  %s4590_s20 = sphi %s4659_s20, %s5952_s20   ;;  %s4586_s19 = sphi %s4657_s19, %s5951_s19   ;;  %s4582_s18 = sphi %s4655_s18, %s5950_s18  }
   0xa   : > { %p54_p0 = scmp.ne.s32.totalorder %s4586_s19, %s4582_s18  ;;  %p4695_p1 = scmp.eq.s32.totalorder %s3441_s26, 0 }
   0xb   : > { %p4699_p2 = scmp.eq.s32.totalorder %s3441_s26, 3  ;;  %p3443_p3 = scmp.ge.s32.totalorder %s4610_s25, 1 }
   0xc   : > { %s5931_s27 = scalar_select %p4695_p1, 1, 0 }
   0xd   : > { %s5932_s28 = scalar_select %p4699_p2, 1, 0 }
   0xe   : > { %p191_p4 = scmp.lt.s32.totalorder %s4610_s25, 5  ;;  %p4707_p5 = por %p4695_p1, %p54_p0 }
   0xf   : > { %s4612_s6 = smov [#allocation4]   ;;  %s4613_s9 = smov [#allocation6]  }
  0x10   : > { %s5933_s29 = scalar_select %p4707_p5, 1, 0 }
  0x11   : > { %p4711_p6 = pnand %p3443_p3, %p191_p4  ;;  %s203_s7 = sshll.u32 %s4612_s6, 4  ;;  %s204_s7 = int_to_ptr.vmem [resolvable:$true] %s203_s7 }
  0x12   : > { %s216_s10 = sshll.u32 %s4613_s9, 4  ;;  %s5936_s1 = sld [smem:[#allocation15_spill]]  ;;  %s4723_s10 = int_to_ptr.vmem [resolvable:$true] %s216_s10 }
  0x13   : > { %s5934_s30 = scalar_select %p4711_p6, 1, 0 }
  0x14   : > { %p3938_p7 = pneg %p4711_p6 }
  0x16   : > { %p4719_p8 = pnand %p3938_p7, %p4695_p1 }
  0x18   : > { %s4454_s13 = scalar_lea.hbm %s5936_s1, 1024  ;;  %p4456_p10 = pneg %p4719_p8 }
  0x19   : > { %p4455_p9 = scmp.ne.s32.totalorder %s5936_s1, %s4454_s13  ;;  %p4461_p13 = scmp.lt.u32.totalorder %s4454_s13, %s5936_s1 }
  0x1b   : > { %p4457_p11 = pnand %p4456_p10, %p4455_p9 }
  0x1d   : > { %p4458_p12 = pneg %p4457_p11 }
  0x1f   : > { %p4463_p0 = pnand %p4461_p13, %p4458_p12 }
  0x21   : > { %4466 = shalt.err (!%p4463_p0)
}
  0x22   : > { %s4467_s18 = scalar_lea.vmem %s204_s7, 1024  ;;  %p4475_p1 = scmp.lt.s32.totalorder %s204_s7, %s204_s7 }
  0x23   : > { %p4468_p3 = scmp.ne.s32.totalorder %s204_s7, %s4467_s18  ;;  %p4476_p5 = scmp.lt.s32.totalorder %s4467_s18, %s4467_s18 }
  0x25   : > { %p4470_p4 = pnand %p4468_p3, %p4456_p10  ;;  %p4477_p6 = por %p4476_p5, %p4475_p1 }
  0x27   : > { %p4471_p7 = pneg %p4470_p4 }
  0x29   : > { %p4478_p2 = pnand %p4477_p6, %p4471_p7 }
  0x2b   : > { %4481 = shalt.err (!%p4478_p2)
}
  0x2c   : > { %s4614_s26 = smov 512   ;;  %s4615_s6 = smov 32  }
  0x2d   : > { %3941 = dma.hbm_to_vmem [thread:$0]  (!%p4719_p8), %s5936_s1, 1024, %s204_s7, [#allocation5], %s4614_s26, %s4614_s26, %s4615_s6  }
  0x2e   : > { %s5937_s2 = sld [smem:[#allocation16_spill]] }
  0x34   : > { %s4482_s14 = scalar_lea.hbm %s5937_s2, 3072 }
  0x35   : > { %p4483_p9 = scmp.ne.s32.totalorder %s5937_s2, %s4482_s14  ;;  %p4489_p5 = scmp.lt.u32.totalorder %s4482_s14, %s5937_s2 }
  0x37   : > { %p4485_p1 = pnand %p4483_p9, %p4456_p10 }
  0x39   : > { %p4486_p2 = pneg %p4485_p1 }
  0x3b   : > { %p4491_p6 = pnand %p4489_p5, %p4486_p2 }
  0x3d   : > { %4494 = shalt.err (!%p4491_p6)
}
  0x3e   : > { %s4495_s7 = scalar_lea.vmem %s4723_s10, 3072  ;;  %p4503_p0 = scmp.lt.s32.totalorder %s4723_s10, %s4723_s10 }
  0x3f   : > { %p4496_p11 = scmp.ne.s32.totalorder %s4723_s10, %s4495_s7  ;;  %p4504_p3 = scmp.lt.s32.totalorder %s4495_s7, %s4495_s7 }
  0x41   : > { %p4498_p12 = pnand %p4496_p11, %p4456_p10  ;;  %p4505_p4 = por %p4504_p3, %p4503_p0 }
  0x43   : > { %p4499_p13 = pneg %p4498_p12 }
  0x45   : > { %p4506_p7 = pnand %p4505_p4, %p4499_p13 }
  0x47   : > { %4509 = shalt.err (!%p4506_p7)
}
  0x48   : > { %s4616_s26 = smov 192   ;;  %s4617_s6 = smov 12  }
  0x49   : > { %3944 = dma.hbm_to_vmem [thread:$0]  (!%p4719_p8), %s5937_s2, 3072, %s4723_s10, [#allocation5], %s4616_s26, %s4616_s26, %s4617_s6  }
  0x4a   : > { %s29_s12 = sadd.s32 1, %s4602_s23  ;;  %s32_s13 = sadd.s32 1, %s4606_s24 }
  0x4b   : > { %p30_p10 = scmp.ge.s32.totalorder %s29_s12, 2  ;;  %s41_s14 = sadd.s32 1, %s4590_s20 }
  0x4c   : > { %p48_p9 = scmp.ne.s32.totalorder %s4590_s20, %s4586_s19  ;;  %p49_p1 = scmp.eq.s32.totalorder %s4610_s25, 0 }
  0x4d   : > { %s5956_s12 = smov (%p30_p10, %s29_s12), 0  ;;  %s5958_s13 = smov (!%p30_p10, %s32_s13), %s4606_s24 }
  0x4e   : > { %5938 = sst [smem:[#allocation13_spill]] %s5956_s12  ;;  %s37_s15 = ssub.s32 %s4602_s23, %s5956_s12 }
  0x4f   : > { %p34_p2 = scmp.ge.s32.totalorder %s5958_s13, 2  ;;  %p5939_p5 = scmp.ne.s32.totalorder %s5932_s28, 0 }
  0x50   : > { %p4789_p8 = por %p49_p1, %p48_p9  ;;  %p3951_p11 = scmp.lt.s32.totalorder %s4610_s25, 4 }
  0x51   : > { %p4785_p6 = por %p5939_p5, %p48_p9  ;;  %s5960_s13 = smov (%p34_p2, %s5958_s13), 0 }
  0x52   : > { %5942 = sst [smem:[#allocation14_spill]] %s5960_s13  ;;  %s230_s16 = sand.u32 1, %s4590_s20  }
  0x53   : > { %s3448_s17 = sshll.u32 %s4602_s23, 4  ;;  %s36_s18 = ssub.s32 %s4606_s24, %s5960_s13 }
  0x54   : > { %s38_s7 = sor.u32 %s37_s15, %s36_s18  ;;  %s3447_s26 = sshll.u32 %s230_s16, 7 }
  0x55   : > { %p39_p12 = scmp.eq.s32.totalorder %s38_s7, 0  ;;  %s3449_s28 = sshll.u32 %s4606_s24, 5 }
  0x56   : > { %s234_s6 = scalar_lea.vmem [#allocation2], %s3447_s26  ;;  %s240_s1 = sadd.s32 %s3449_s28, %s3448_s17 }
  0x57   : > { %s243_s9 = sshll.u32 %s234_s6, 4  ;;  %s3450_s2 = sshll.u32 %s240_s1, 7  ;;  %s4804_s9 = int_to_ptr.vmem [resolvable:$true] %s243_s9 }
  0x58   : > { %s4802_s11 = scalar_select %p39_p12, %s4590_s20, %s41_s14  }
  0x59   : > { %p4810_p13 = pnand %p3951_p11, %p4789_p8  ;;  %s4817_s15 = scalar_lea.hbm %s5915_s0, %s3450_s2 }
  0x5a   : > { %s4819_s14 = scalar_lea.sflag [#allocation3], %s230_s16  ;;  %s4510_s1 = scalar_lea.hbm %s4817_s15, 2048 }
  0x5b   : > { %p4511_p0 = scmp.ne.s32.totalorder %s4817_s15, %s4510_s1  ;;  %p4512_p3 = pneg %p4810_p13 }
  0x5c   : > { %s4515_s13 = scalar_lea.hbm %s5915_s0, 8192  ;;  %p4516_p10 = scmp.lt.u32.totalorder %s4817_s15, %s5915_s0 }
  0x5d   : > { %p4513_p4 = pnand %p4512_p3, %p4511_p0  ;;  %p4517_p9 = scmp.lt.u32.totalorder %s4515_s13, %s4510_s1 }
  0x5e   : > { %p4519_p2 = scmp.lt.u32.totalorder %s4510_s1, %s4817_s15 }
  0x5f   : > { %p4514_p7 = pneg %p4513_p4  ;;  %p4518_p1 = por %p4517_p9, %p4516_p10 }
  0x61   : > { %p4520_p5 = por %p4519_p2, %p4518_p1 }
  0x63   : > { %p4521_p8 = pnand %p4520_p5, %p4514_p7 }
  0x65   : > { %4524 = shalt.err (!%p4521_p8)
}
  0x66   : > { %s4525_s16 = scalar_lea.vmem %s4804_s9, 2048  ;;  %s4618_s18 = smov [#allocation2]  }
  0x67   : > { %p4526_p11 = scmp.ne.s32.totalorder %s4804_s9, %s4525_s16  ;;  %s4530_s7 = sshll.u32 %s4618_s18, 4  ;;  %s4531_s7 = int_to_ptr.vmem [resolvable:$false] %s4530_s7 }
  0x68   : > { %s4532_s26 = scalar_lea.vmem %s4531_s7, 4096  ;;  %p4533_p4 = scmp.lt.s32.totalorder %s4804_s9, %s4531_s7 }
  0x69   : > { %p4528_p12 = pnand %p4526_p11, %p4512_p3  ;;  %p4534_p10 = scmp.lt.s32.totalorder %s4532_s26, %s4525_s16 }
  0x6b   : > { %p4529_p0 = pneg %p4528_p12  ;;  %p4535_p9 = por %p4534_p10, %p4533_p4 }
  0x6d   : > { %p4536_p1 = pnand %p4535_p9, %p4529_p0 }
  0x6f   : > { %4539 = shalt.err (!%p4536_p1)
}
  0x70   : > { %s4619_s28 = smov 128   ;;  %s4620_s6 = smov 8  }
  0x71   : > { %3948 = dma.hbm_to_vmem [thread:$0]  (!%p4810_p13), %s4817_s15, 2048, %s4804_s9, %s4819_s14, %s4619_s28, %s4619_s28, %s4620_s6  }
  0x72   : > { %p5944_p3 = scmp.ne.s32.totalorder %s5934_s30, 0 }
  0x73   : > { %s4850_s1 = sand.u32 (!%p5944_p3), 1, %s4586_s19   ;;  %p5945_p7 = scmp.ne.s32.totalorder (!%p5944_p3), %s5933_s29, 0 }
  0x74   : > { %255 = sbr.rel (%p5944_p3) target bundleno = 974 (0x3ce), region = 32  ;;  %s3452_s10 = sshll.u32 (!%p5944_p3), %s4850_s1, 7 }
  0x75   : > { %s258_s23 = scalar_lea.sflag (!%p5944_p3), [#allocation3], %s4850_s1  ;;  %s4854_s13 = scalar_lea.vmem (!%p5944_p3), [#allocation2], %s3452_s10 }
  0x7b   : > { %4573 = dma.done.wait (%p5945_p7), %s258_s23, 2048  }
  0x7c   : > { %4575 = vsyncadd (%p5945_p7), %s258_s23, 4294965248  ;;  %p5946_p13 = scmp.ne.s32.totalorder %s5931_s27, 0 }
  0x7e   : > { %4577 = dma.done.wait (%p5946_p13), [#allocation5], 4096  }
  0x7f   : > { %4579 = vsyncadd (%p5946_p13), [#allocation5], 4294963200  ;;  %v312_v0 = vld [vmem:[%s4854_s13] sm:$0xff]  ;;  %v314_v1 = vld [vmem:[%s4854_s13 + $0x10] sm:$0xff]  ;;  %s5045_s27 = sshll.u32 %s4850_s1, 8  ;;  %vm1347_vm0 = vcmask 257024  }
  0x80   : > { %328 = vadd.xlane.f32.xlu0 %v312_v0  ;;  %332 = vadd.xlane.f32.xlu1 %v314_v1  ;;  %v313_v2 = vld [vmem:[%s4854_s13 + $0x8] sm:$0xff]  ;;  %v315_v3 = vld [vmem:[%s4854_s13 + $0x18] sm:$0xff]  ;;  %v316_v4 = vld [vmem:[%s4854_s13 + $0x20] sm:$0xff]  ;;  %s5054_s29 = scalar_lea.vmem [#allocation7], %s5045_s27  ;;  %s5060_s30 = scalar_lea.vmem [#allocation8], %s5045_s27 }
  0x81   : > { %v317_v5 = vld [vmem:[%s4854_s13 + $0x28] sm:$0xff]  ;;  %v318_v6 = vld [vmem:[%s4854_s13 + $0x30] sm:$0xff]  ;;  %v4872_v7 = vld [vmem:[%s4854_s13 + $0x38] sm:$0xff]  ;;  %s4622_s12 = smov 96   ;;  %s5075_s9 = scalar_lea.vmem [#allocation9], %s5045_s27 }
  0x82   : > { %v4875_v8 = vld [vmem:[%s4854_s13 + $0x40] sm:$0xff]  ;;  %v4878_v9 = vld [vmem:[%s4854_s13 + $0x48] sm:$0xff]  ;;  %v4884_v10 = vld [vmem:[%s4854_s13 + $0x50] sm:$0xff]  ;;  %s4623_s15 = smov 64   ;;  %s4624_s14 = smov 32  }
  0x83   : > { %v4887_v11 = vld [vmem:[%s4854_s13 + $0x58] sm:$0xff]  ;;  %v4892_v12 = vld [vmem:[%s4854_s13 + $0x60] sm:$0xff]  ;;  %v4895_v13 = vld [vmem:[%s4854_s13 + $0x68] sm:$0xff]  ;;  %s3677_s2 = sshll.u32 (%p4785_p6), %s4594_s21, 4  ;;  %s3678_s17 = sshll.u32 (%p4785_p6), %s4598_s22, 7 }
  0x84   : > { %330 = vadd.xlane.f32.xlu0 %v313_v2  ;;  %334 = vadd.xlane.f32.xlu1 %v315_v3  ;;  %v4900_v14 = vld [vmem:[%s4854_s13 + $0x70] sm:$0xff]  ;;  %v4903_v15 = vld [vmem:[%s4854_s13 + $0x78] sm:$0xff]  ;;  %v4392_v17 = vld [vmem:[#allocation6] ss:$12 sps:$4 sm:$0xff]   ;;  %s2389_s16 = sadd.s32 (%p4785_p6), %s3678_s17, %s3677_s2 }
  0x85   : > { %v4390_v16 = vld [vmem:[#allocation6 + $0x4] ss:$12 sps:$4 sm:$0xff]   ;;  %v4393_v18 = vld [vmem:[#allocation6 + $0x1c] ss:$12 sps:$4 sm:$0xff]   ;;  %s3679_s18 = sshll.u32 (%p4785_p6), %s2389_s16, 2 }
  0x86   : > { %v4395_v19 = vld [vmem:[#allocation6 + $0x8] ss:$12 sps:$4 sm:$0xff]   ;;  %721 = vmatprep.subr.bf16.mxu0 %v4390_v16  ;;  %v4396_v58 = vld [vmem:[#allocation6 + $0x18] ss:$12 sps:$4 sm:$0xff]   ;;  %s5688_s28 = scalar_lea.vmem (%p4785_p6), %s5918_s3, %s3679_s18 }
  0x87   : > { %722 = vmatpush1.bf16.msra.mxu0 %v4392_v17  ;;  %3896 = vmatprep.subr.bf16.mxu1 %v4395_v19 }
  0x88   : > { %336 = vadd.xlane.f32.xlu0 %v316_v4  ;;  %338 = vadd.xlane.f32.xlu1 %v317_v5 }
  0x89   : > { %723 = vmatprep.subr.bf16.mxu0 %v4393_v18  ;;  %3897 = vmatpush3.bf16.msra.mxu1 %v4395_v19  ;;  %v4401_v18 = vld [vmem:[#allocation6 + $0x4c] ss:$12 sps:$4 sm:$0xff]  }
  0x8a   : > { %v4403_v19 = vld [vmem:[#allocation6 + $0x38] ss:$12 sps:$4 sm:$0xff]  }
  0x8b   : > { %724 = vmatpush1.bf16.msra.mxu0 %v4396_v58 }
  0x8c   : > { %340 = vadd.xlane.f32.xlu0 %v318_v6  ;;  %342 = vadd.xlane.f32.xlu1 %v4872_v7 }
  0x90   : > { %344 = vadd.xlane.f32.xlu0 %v4875_v8  ;;  %346 = vadd.xlane.f32.xlu1 %v4878_v9 }
  0x94   : > { %348 = vadd.xlane.f32.xlu0 %v4884_v10  ;;  %350 = vadd.xlane.f32.xlu1 %v4887_v11 }
  0x98   : > { %352 = vadd.xlane.f32.xlu0 %v4892_v12  ;;  %354 = vadd.xlane.f32.xlu1 %v4895_v13 }
  0x9c   : > { %356 = vadd.xlane.f32.xlu0 %v4900_v14  ;;  %358 = vadd.xlane.f32.xlu1 %v4903_v15 }
 0x10d   : > { %v329_v20 = vpop.xlane.xlu0 %328  ;;  %v333_v21 = vpop.xlane.xlu1 %332 }
 0x10e   : > { %v361_v22 = vmul.f32 0.0078125, %v329_v20  ;;  %v363_v23 = vmul.f32 0.0078125, %v333_v21 }
 0x110   : > { %v4907_v24 = vsub.f32 %v312_v0, %v361_v22  ;;  %v4909_v25 = vsub.f32 %v314_v1, %v363_v23  ;;  %v4397_v0 = vld [vmem:[#allocation6 + $0x34] ss:$12 sps:$4 sm:$0xff]  }
 0x111   : > { %v331_v26 = vpop.xlane.xlu0 %330  ;;  %v335_v27 = vpop.xlane.xlu1 %334  ;;  %v4399_v1 = vld [vmem:[#allocation6 + $0x20] ss:$12 sps:$4 sm:$0xff]   ;;  %725 = vmatprep.subr.bf16.mxu0 %v4397_v0  ;;  %v4404_v22 = vld [vmem:[#allocation6 + $0x48] ss:$12 sps:$4 sm:$0xff]  }
 0x112   : > { %v362_v28 = vmul.f32 0.0078125, %v331_v26  ;;  %v393_v29 = vmul.f32 %v4907_v24, %v4907_v24  ;;  %v364_v30 = vmul.f32 0.0078125, %v335_v27  ;;  %v395_v31 = vmul.f32 %v4909_v25, %v4909_v25  ;;  %3898 = vmatprep.subr.bf16.mxu1 %v4399_v1 }
 0x113   : > { %3899 = vmatpush3.bf16.msra.mxu1 %v4399_v1 }
 0x114   : > { %409 = vadd.xlane.f32.xlu0 %v393_v29  ;;  %v4915_v32 = vsub.f32 %v313_v2, %v362_v28  ;;  %v4917_v33 = vsub.f32 %v315_v3, %v364_v30  ;;  %3900 = vmatprep.subr.bf16.mxu1 %v4403_v19  ;;  %v4405_v29 = vld [vmem:[#allocation6 + $0x64] ss:$12 sps:$4 sm:$0xff]  }
 0x115   : > { %v337_v34 = vpop.xlane.xlu0 %336  ;;  %v339_v35 = vpop.xlane.xlu1 %338  ;;  %v4407_v30 = vld [vmem:[#allocation6 + $0x50] ss:$12 sps:$4 sm:$0xff]  }
 0x116   : > { %v365_v36 = vmul.f32 0.0078125, %v337_v34  ;;  %v394_v37 = vmul.f32 %v4915_v32, %v4915_v32  ;;  %v366_v38 = vmul.f32 0.0078125, %v339_v35  ;;  %v396_v40 = vmul.f32 %v4917_v33, %v4917_v33  ;;  %v4411_v35 = vld [vmem:[#allocation6 + $0x68] ss:$12 sps:$4 sm:$0xff]  }
 0x117   : > { %3901 = vmatpush3.bf16.msra.mxu1 %v4403_v19 }
 0x118   : > { %v4921_v39 = vsub.f32 %v316_v4, %v365_v36  ;;  %413 = vadd.xlane.f32.xlu0 %v395_v31  ;;  %411 = vadd.xlane.f32.xlu1 %v394_v37  ;;  %v4925_v41 = vsub.f32 %v317_v5, %v366_v38  ;;  %v4408_v31 = vld [vmem:[#allocation6 + $0x60] ss:$12 sps:$4 sm:$0xff]   ;;  %v4412_v36 = vld [vmem:[#allocation6 + $0x78] ss:$12 sps:$4 sm:$0xff]  }
 0x119   : > { %v341_v42 = vpop.xlane.xlu0 %340  ;;  %v343_v43 = vpop.xlane.xlu1 %342  ;;  %3902 = vmatprep.subr.bf16.mxu1 %v4407_v30  ;;  %v4413_v37 = vld [vmem:[#allocation6 + $0x94] ss:$12 sps:$4 sm:$0xff]  }
 0x11a   : > { %v367_v44 = vmul.f32 0.0078125, %v341_v42  ;;  %v397_v45 = vmul.f32 %v4921_v39, %v4921_v39  ;;  %v368_v46 = vmul.f32 0.0078125, %v343_v43  ;;  %v398_v48 = vmul.f32 %v4925_v41, %v4925_v41  ;;  %v4415_v38 = vld [vmem:[#allocation6 + $0x80] ss:$12 sps:$4 sm:$0xff]   ;;  %v4419_v43 = vld [vmem:[#allocation6 + $0x98] ss:$12 sps:$4 sm:$0xff]  }
 0x11b   : > { %3903 = vmatpush3.bf16.msra.mxu1 %v4407_v30  ;;  %v4417_v42 = vld [vmem:[#allocation6 + $0xac] ss:$12 sps:$4 sm:$0xff]  }
 0x11c   : > { %v4929_v47 = vsub.f32 %v318_v6, %v367_v44  ;;  %415 = vadd.xlane.f32.xlu1 %v396_v40  ;;  %417 = vadd.xlane.f32.xlu0 %v397_v45  ;;  %v4934_v49 = vsub.f32 %v4872_v7, %v368_v46  ;;  %v4400_v7 = vld [vmem:[#allocation6 + $0x30] ss:$12 sps:$4 sm:$0xff]   ;;  %v4420_v44 = vld [vmem:[#allocation6 + $0xa8] ss:$12 sps:$4 sm:$0xff]   ;;  %v4621_v46 = vmov 0  }
 0x11d   : > { %v345_v50 = vpop.xlane.xlu0 %344  ;;  %v347_v51 = vpop.xlane.xlu1 %346  ;;  %726 = vmatpush1.bf16.msra.mxu0 %v4400_v7  ;;  %3904 = vmatprep.subr.bf16.mxu1 %v4411_v35  ;;  %v4416_v40 = vld [vmem:[#allocation6 + $0x90] ss:$12 sps:$4 sm:$0xff]  }
 0x11e   : > { %v369_v52 = vmul.f32 0.0078125, %v345_v50  ;;  %v399_v53 = vmul.f32 %v4929_v47, %v4929_v47  ;;  %v370_v54 = vmul.f32 0.0078125, %v347_v51  ;;  %v400_v57 = vmul.f32 %v4934_v49, %v4934_v49  ;;  %727 = vmatprep.subr.bf16.mxu0 %v4401_v18  ;;  %v4421_v45 = vld [vmem:[#allocation6 + $0xb0] ss:$12 sps:$4 sm:$0xff]   ;;  %753 = vmatprep.mubr.bf16.mxu0 %v4621_v46 }
 0x11f   : > { %3905 = vmatpush3.bf16.msra.mxu1 %v4411_v35 }
 0x120   : > { %v4939_v55 = vsub.f32 %v4875_v8, %v369_v52  ;;  %419 = vadd.xlane.f32.xlu1 %v398_v48  ;;  %421 = vadd.xlane.f32.xlu0 %v399_v53  ;;  %v4942_v56 = vsub.f32 %v4878_v9, %v370_v54 }
 0x121   : > { %v349_v59 = vpop.xlane.xlu0 %348  ;;  %v351_v60 = vpop.xlane.xlu1 %350  ;;  %728 = vmatpush1.bf16.msra.mxu0 %v4404_v22  ;;  %3906 = vmatprep.subr.bf16.mxu1 %v4415_v38  ;;  %v4982_v22 = vld [vmem:[#allocation4] ss:$0 sm:$0xff] }
 0x122   : > { %v371_v61 = vmul.f32 0.0078125, %v349_v59  ;;  %v401_v62 = vmul.f32 %v4939_v55, %v4939_v55  ;;  %v372_v63 = vmul.f32 0.0078125, %v351_v60  ;;  %v402_v4 = vmul.f32 %v4942_v56, %v4942_v56  ;;  %729 = vmatprep.subr.bf16.mxu0 %v4405_v29 }
 0x123   : > { %3907 = vmatpush3.bf16.msra.mxu1 %v4415_v38 }
 0x124   : > { %v4949_v2 = vsub.f32 %v4884_v10, %v371_v61  ;;  %423 = vadd.xlane.f32.xlu1 %v400_v57  ;;  %425 = vadd.xlane.f32.xlu0 %v401_v62  ;;  %v4952_v3 = vsub.f32 %v4887_v11, %v372_v63 }
 0x125   : > { %v353_v5 = vpop.xlane.xlu0 %352  ;;  %v355_v6 = vpop.xlane.xlu1 %354  ;;  %730 = vmatpush1.bf16.msra.mxu0 %v4408_v31  ;;  %3908 = vmatprep.subr.bf16.mxu1 %v4419_v43 }
 0x126   : > { %v373_v8 = vmul.f32 0.0078125, %v353_v5  ;;  %v403_v9 = vmul.f32 %v4949_v2, %v4949_v2  ;;  %v374_v16 = vmul.f32 0.0078125, %v355_v6  ;;  %v404_v17 = vmul.f32 %v4952_v3, %v4952_v3 }
 0x127   : > { %3909 = vmatpush3.bf16.msra.mxu1 %v4419_v43 }
 0x128   : > { %v4959_v10 = vsub.f32 %v4892_v12, %v373_v8  ;;  %427 = vadd.xlane.f32.xlu1 %v402_v4  ;;  %429 = vadd.xlane.f32.xlu0 %v403_v9  ;;  %v4962_v11 = vsub.f32 %v4895_v13, %v374_v16 }
 0x129   : > { %v357_v20 = vpop.xlane.xlu0 %356  ;;  %v359_v21 = vpop.xlane.xlu1 %358  ;;  %3910 = vmatprep.subr.bf16.mxu1 %v4421_v45 }
 0x12a   : > { %v375_v23 = vmul.f32 0.0078125, %v357_v20  ;;  %v405_v26 = vmul.f32 %v4959_v10, %v4959_v10  ;;  %v376_v27 = vmul.f32 0.0078125, %v359_v21  ;;  %v406_v28 = vmul.f32 %v4962_v11, %v4962_v11 }
 0x12b   : > { %3911 = vmatpush3.bf16.msra.mxu1 %v4421_v45 }
 0x12c   : > { %v4969_v12 = vsub.f32 %v4900_v14, %v375_v23  ;;  %431 = vadd.xlane.f32.xlu1 %v404_v17  ;;  %433 = vadd.xlane.f32.xlu0 %v405_v26  ;;  %v4972_v13 = vsub.f32 %v4903_v15, %v376_v27  ;;  %v4409_v15 = vld [vmem:[#allocation6 + $0x7c] ss:$12 sps:$4 sm:$0xff]  }
 0x12d   : > { %731 = vmatprep.subr.bf16.mxu0 %v4409_v15 }
 0x12e   : > { %v407_v34 = vmul.f32 %v4969_v12, %v4969_v12  ;;  %v408_v14 = vmul.f32 %v4972_v13, %v4972_v13  ;;  %732 = vmatpush1.bf16.msra.mxu0 %v4412_v36 }
 0x12f   : > { %733 = vmatprep.subr.bf16.mxu0 %v4413_v37 }
 0x130   : > { %435 = vadd.xlane.f32.xlu1 %v406_v28  ;;  %437 = vadd.xlane.f32.xlu0 %v407_v34 }
 0x132   : > { %734 = vmatpush1.bf16.msra.mxu0 %v4416_v40 }
 0x133   : > { %735 = vmatprep.subr.bf16.mxu0 %v4417_v42 }
 0x134   : > { %439 = vadd.xlane.f32.xlu1 %v408_v14 }
 0x136   : > { %736 = vmatpush1.bf16.msra.mxu0 %v4420_v44 }
 0x1a1   : > { %v410_v48 = vpop.xlane.xlu0 %409 }
 0x1a2   : > { %v441_v50 = vmul.f32 0.0078125, %v410_v48 }
 0x1a4   : > { %v457_v51 = vadd.f32 1e-05, %v441_v50 }
 0x1a5   : > { %v412_v52 = vpop.xlane.xlu1 %411  ;;  %v414_v53 = vpop.xlane.xlu0 %413 }
 0x1a6   : > { %4422 = vrsqrt.f32 %v457_v51  ;;  %v442_v54 = vmul.f32 0.0078125, %v412_v52  ;;  %v443_v57 = vmul.f32 0.0078125, %v414_v53 }
 0x1a8   : > { %v458_v58 = vadd.f32 1e-05, %v442_v54  ;;  %v459_v59 = vadd.f32 1e-05, %v443_v57 }
 0x1a9   : > { %v416_v60 = vpop.xlane.xlu1 %415  ;;  %v418_v61 = vpop.xlane.xlu0 %417 }
 0x1aa   : > { %4424 = vrsqrt.f32 %v458_v58  ;;  %v444_v62 = vmul.f32 0.0078125, %v416_v60  ;;  %v445_v63 = vmul.f32 0.0078125, %v418_v61 }
 0x1ab   : > { %4426 = vrsqrt.f32 %v459_v59 }
 0x1ac   : > { %v460_v0 = vadd.f32 1e-05, %v444_v62  ;;  %v461_v1 = vadd.f32 1e-05, %v445_v63 }
 0x1ad   : > { %v420_v4 = vpop.xlane.xlu1 %419  ;;  %v422_v5 = vpop.xlane.xlu0 %421 }
 0x1ae   : > { %4428 = vrsqrt.f32 %v460_v0  ;;  %v446_v6 = vmul.f32 0.0078125, %v420_v4  ;;  %v447_v7 = vmul.f32 0.0078125, %v422_v5 }
 0x1af   : > { %4430 = vrsqrt.f32 %v461_v1 }
 0x1b0   : > { %v4423_v8 = vpop.eup %4422  ;;  %v462_v9 = vadd.f32 1e-05, %v446_v6  ;;  %v463_v16 = vadd.f32 1e-05, %v447_v7 }
 0x1b1   : > { %v424_v17 = vpop.xlane.xlu1 %423  ;;  %v426_v18 = vpop.xlane.xlu0 %425  ;;  %v489_v19 = vmul.f32 %v4423_v8, %v4907_v24  ;;  %v4986_v24 = vld [vmem:[#allocation4 + $0x1] ss:$0 sm:$0xff] }
 0x1b2   : > { %4432 = vrsqrt.f32 %v462_v9  ;;  %v448_v20 = vmul.f32 0.0078125, %v424_v17  ;;  %v449_v21 = vmul.f32 0.0078125, %v426_v18 }
 0x1b3   : > { %4434 = vrsqrt.f32 %v463_v16  ;;  %v505_v34 = vmul.f32 %v489_v19, %v4982_v22 }
 0x1b4   : > { %v4425_v23 = vpop.eup %4424  ;;  %v464_v26 = vadd.f32 1e-05, %v448_v20  ;;  %v465_v27 = vadd.f32 1e-05, %v449_v21 }
 0x1b5   : > { %v4427_v28 = vpop.eup %4426  ;;  %v428_v29 = vpop.xlane.xlu1 %427  ;;  %v490_v31 = vmul.f32 %v4425_v23, %v4915_v32  ;;  %v521_v45 = vadd.f32 %v505_v34, %v4986_v24 }
 0x1b6   : > { %v430_v30 = vpop.xlane.xlu0 %429  ;;  %4436 = vrsqrt.f32 %v464_v26  ;;  %v450_v14 = vmul.f32 0.0078125, %v428_v29  ;;  %v491_v35 = vmul.f32 %v4427_v28, %v4909_v25 }
 0x1b7   : > { %v451_v15 = vmul.f32 0.0078125, %v430_v30  ;;  %4438 = vrsqrt.f32 %v465_v27  ;;  %v506_v36 = vmul.f32 %v490_v31, %v4982_v22 }
 0x1b8   : > { %v4429_v37 = vpop.eup %4428  ;;  %v466_v38 = vadd.f32 1e-05, %v450_v14  ;;  %v507_v42 = vmul.f32 %v491_v35, %v4982_v22 }
 0x1b9   : > { %v467_v40 = vadd.f32 1e-05, %v451_v15  ;;  %v4431_v43 = vpop.eup %4430  ;;  %v432_v44 = vpop.xlane.xlu1 %431  ;;  %v522_v48 = vadd.f32 %v506_v36, %v4986_v24  ;;  %v492_v50 = vmul.f32 %v4429_v37, %v4917_v33 }
 0x1ba   : > { %v434_v32 = vpop.xlane.xlu0 %433  ;;  %4440 = vrsqrt.f32 %v466_v38  ;;  %v452_v51 = vmul.f32 0.0078125, %v432_v44  ;;  %v493_v54 = vmul.f32 %v4431_v43, %v4921_v39  ;;  %v523_v60 = vadd.f32 %v507_v42, %v4986_v24 }
 0x1bb   : > { %v453_v25 = vmul.f32 0.0078125, %v434_v32  ;;  %4442 = vrsqrt.f32 %v467_v40  ;;  %v569_v52 = vpack.c.bf16 %v522_v48, %v521_v45  ;;  %v508_v53 = vmul.f32 %v492_v50, %v4982_v22 }
 0x1bc   : > { %v4433_v57 = vpop.eup %4432  ;;  %v468_v58 = vadd.f32 1e-05, %v452_v51  ;;  %v509_v1 = vmul.f32 %v493_v54, %v4982_v22 }
 0x1bd   : > { %v469_v59 = vadd.f32 1e-05, %v453_v25  ;;  %v4435_v61 = vpop.eup %4434  ;;  %v436_v62 = vpop.xlane.xlu1 %435  ;;  %754 = vmatmul.mubr.bf16.vlgmr.msra.gmra.mrb[0].mxu0 %v569_v52  ;;  %3912 = vmatprep.mubr.bf16.mxu1 %v569_v52  ;;  %v524_v33 = vadd.f32 %v508_v53, %v4986_v24  ;;  %v494_v0 = vmul.f32 %v4433_v57, %v4925_v41 }
 0x1be   : > { %v438_v63 = vpop.xlane.xlu0 %437  ;;  %4444 = vrsqrt.f32 %v468_v58  ;;  %v454_v4 = vmul.f32 0.0078125, %v436_v62  ;;  %763 = vmatprep.mubr.bf16.mxu0 %v4621_v46  ;;  %v495_v39 = vmul.f32 %v4435_v61, %v4929_v47  ;;  %v525_v19 = vadd.f32 %v509_v1, %v4986_v24 }
 0x1bf   : > { %v455_v5 = vmul.f32 0.0078125, %v438_v63  ;;  %4446 = vrsqrt.f32 %v469_v59  ;;  %v570_v6 = vpack.c.bf16 %v524_v33, %v523_v60  ;;  %v510_v7 = vmul.f32 %v494_v0, %v4982_v22  ;;  %v311_v33 = vld [vmem:[#allocation4 + $0x6] ss:$8 sm:$0x7] }
 0x1c0   : > { %v4437_v8 = vpop.eup %4436  ;;  %v470_v9 = vadd.f32 1e-05, %v454_v4  ;;  %v511_v17 = vmul.f32 %v495_v39, %v4982_v22 }
 0x1c1   : > { %v471_v16 = vadd.f32 1e-05, %v455_v5  ;;  %v4439_v18 = vpop.eup %4438  ;;  %v440_v41 = vpop.xlane.xlu1 %439  ;;  %3913 = vmatmul.mubr.bf16.vlgmr.msra.gmra.mrb[0].mxu1 %v570_v6  ;;  %v526_v20 = vadd.f32 %v510_v7, %v4986_v24  ;;  %v496_v21 = vmul.f32 %v4437_v8, %v4934_v49 }
 0x1c2   : > { %4448 = vrsqrt.f32 %v470_v9  ;;  %v456_v47 = vmul.f32 0.0078125, %v440_v41  ;;  %v497_v23 = vmul.f32 %v4439_v18, %v4939_v55  ;;  %v527_v30 = vadd.f32 %v511_v17, %v4986_v24 }
 0x1c3   : > { %4450 = vrsqrt.f32 %v471_v16  ;;  %v571_v26 = vpack.c.bf16 %v526_v20, %v525_v19  ;;  %v512_v27 = vmul.f32 %v496_v21, %v4982_v22 }
 0x1c4   : > { %v4441_v28 = vpop.eup %4440  ;;  %v472_v29 = vadd.f32 1e-05, %v456_v47  ;;  %v513_v49 = vmul.f32 %v497_v23, %v4982_v22 }
 0x1c5   : > { %v4443_v31 = vpop.eup %4442  ;;  %764 = vmatmul.mubr.bf16.gmra.mrb[4].mxu0 %v570_v6  ;;  %3916 = vmatprep.mubr.bf16.mxu1 %v571_v26  ;;  %v528_v34 = vadd.f32 %v512_v27, %v4986_v24  ;;  %v498_v14 = vmul.f32 %v4441_v28, %v4942_v56 }
 0x1c6   : > { %4452 = vrsqrt.f32 %v472_v29  ;;  %773 = vmatprep.mubr.bf16.mxu0 %v4621_v46  ;;  %v499_v55 = vmul.f32 %v4443_v31, %v4949_v2  ;;  %v529_v40 = vadd.f32 %v513_v49, %v4986_v24 }
 0x1c7   : > { %v572_v15 = vpack.c.bf16 %v528_v34, %v527_v30  ;;  %v514_v35 = vmul.f32 %v498_v14, %v4982_v22 }
 0x1c8   : > { %v4445_v36 = vpop.eup %4444  ;;  %v515_v37 = vmul.f32 %v499_v55, %v4982_v22 }
 0x1c9   : > { %v4447_v38 = vpop.eup %4446  ;;  %3917 = vmatmul.mubr.bf16.gmra.mrb[4].mxu1 %v572_v15  ;;  %v530_v42 = vadd.f32 %v514_v35, %v4986_v24  ;;  %v500_v56 = vmul.f32 %v4445_v36, %v4952_v3 }
 0x1ca   : > { %v501_v43 = vmul.f32 %v4447_v38, %v4959_v10  ;;  %v531_v45 = vadd.f32 %v515_v37, %v4986_v24 }
 0x1cb   : > { %v573_v44 = vpack.c.bf16 %v530_v42, %v529_v40  ;;  %v516_v32 = vmul.f32 %v500_v56, %v4982_v22 }
 0x1cc   : > { %v4449_v2 = vpop.eup %4448  ;;  %v517_v25 = vmul.f32 %v501_v43, %v4982_v22 }
 0x1cd   : > { %v4451_v48 = vpop.eup %4450  ;;  %774 = vmatmul.mubr.bf16.gmra.mrb[8].mxu0 %v571_v26  ;;  %3920 = vmatprep.mubr.bf16.mxu1 %v573_v44  ;;  %v532_v50 = vadd.f32 %v516_v32, %v4986_v24  ;;  %v502_v51 = vmul.f32 %v4449_v2, %v4962_v11 }
 0x1ce   : > { %783 = vmatprep.mubr.bf16.mxu0 %v4621_v46  ;;  %v503_v3 = vmul.f32 %v4451_v48, %v4969_v12  ;;  %v533_v54 = vadd.f32 %v517_v25, %v4986_v24 }
 0x1cf   : > { %v574_v10 = vpack.c.bf16 %v532_v50, %v531_v45  ;;  %v518_v52 = vmul.f32 %v502_v51, %v4982_v22 }
 0x1d0   : > { %v4453_v53 = vpop.eup %4452  ;;  %v519_v59 = vmul.f32 %v503_v3, %v4982_v22 }
 0x1d1   : > { %3921 = vmatmul.mubr.bf16.gmra.mrb[8].mxu1 %v574_v10  ;;  %v534_v57 = vadd.f32 %v518_v52, %v4986_v24  ;;  %v504_v58 = vmul.f32 %v4453_v53, %v4972_v13  ;;  %v578_v13 = vlaneseq }
 0x1d2   : > { %v535_v12 = vadd.f32 %v519_v59, %v4986_v24 }
 0x1d3   : > { %v575_v11 = vpack.c.bf16 %v534_v57, %v533_v54  ;;  %v520_v60 = vmul.f32 %v504_v58, %v4982_v22  ;;  %v579_v22 = vshrl.u32 %v578_v13, 7 }
 0x1d5   : > { %784 = vmatmul.mubr.bf16.gmra.mrb[12].mxu0 %v572_v15  ;;  %3924 = vmatprep.mubr.bf16.mxu1 %v575_v11  ;;  %v536_v61 = vadd.f32 %v520_v60, %v4986_v24  ;;  %v580_v63 = vsub.s32 0, %v579_v22  ;;  %v584_v24 = vsub.s32 1, %v579_v22  ;;  %v588_v1 = vsub.s32 2, %v579_v22 }
 0x1d6   : > { %793 = vmatprep.mubr.bf16.mxu0 %v4621_v46 }
 0x1d7   : > { %v576_v62 = vpack.c.bf16 %v536_v61, %v535_v12  ;;  %v5040_v0 = vrot.slane %v311_v33, %v580_v63  ;;  %v5042_v4 = vrot.slane %v311_v33, %v584_v24  ;;  %v5048_v7 = vrot.slane %v311_v33, %v588_v1 }
 0x1d9   : > { %3925 = vmatmul.mubr.bf16.gmra.mrb[12].mxu1 %v576_v62 }
 0x1dd   : > { %794 = vmatmul.mubr.bf16.gmra.mrb[16].mxu0 %v573_v44 }
 0x1de   : > { %803 = vmatprep.mubr.bf16.mxu0 %v4621_v46 }
 0x1e5   : > { %804 = vmatmul.mubr.bf16.gmra.mrb[20].mxu0 %v574_v10 }
 0x1e6   : > { %813 = vmatprep.mubr.bf16.mxu0 %v4621_v46 }
 0x1ed   : > { %814 = vmatmul.mubr.bf16.gmra.mrb[24].mxu0 %v575_v11 }
 0x1ee   : > { %823 = vmatprep.mubr.bf16.mxu0 %v4621_v46 }
 0x1f5   : > { %824 = vmatmul.mubr.bf16.gmra.mrb[28].mxu0 %v576_v62 }
 0x290   : > { %v755_v5 = vpop.f32.mrb[0].mxu0 }
 0x291   : > { %v756_v39 = vadd.f32 %v755_v5, %v5040_v0  ;;  %v757_v6 = vpop.f32.mrb[1].mxu0 }
 0x292   : > { %v758_v46 = vadd.f32 %v757_v6, %v5042_v4  ;;  %v759_v8 = vpop.f32.mrb[2].mxu0 }
 0x293   : > { %v3688_v9 = vpack.c.bf16 %v756_v39, %v756_v39  ;;  %v760_v16 = vadd.f32 %v759_v8, %v5040_v0  ;;  %v761_v17 = vpop.f32.mrb[3].mxu0 }
 0x294   : > { %v3752_v18 = vpack.c.bf16 %v758_v46, %v758_v46  ;;  %v762_v41 = vadd.f32 %v761_v17, %v5042_v4  ;;  %v3914_v19 = vpop.f32.mrb[0].mxu1 }
 0x295   : > { %1348 = vst.msk [vmem:[%s5054_s29] sm:$0xf] %vm1347_vm0, %v3688_v9  ;;  %v3689_v20 = vpack.c.bf16 %v760_v16, %v760_v16  ;;  %v877_v21 = vadd.f32 %v3914_v19, %v5048_v7  ;;  %v868_v47 = vpop.f32.mrb[1].mxu1  ;;  %v4030_v23 = vpack.i.bf16 %v760_v16, %v756_v39 }
 0x296   : > { %1828 = vst.msk [vmem:[%s5060_s30] sm:$0xf] %vm1347_vm0, %v3752_v18  ;;  %v3753_v26 = vpack.c.bf16 %v762_v41, %v762_v41  ;;  %v869_v27 = vadd.f32 %v868_v47, %v5048_v7  ;;  %v3915_v28 = vpop.f32.mrb[2].mxu1  ;;  %v5065_v29 = vpack.i.bf16 %v762_v41, %v758_v46 }
 0x297   : > { %1349 = vst.msk [vmem:[%s5054_s29 + $0x4] sm:$0xf] %vm1347_vm0, %v3689_v20  ;;  %v3818_v30 = vpack.c.bf16 %v877_v21, %v877_v21  ;;  %v880_v31 = vadd.f32 %v3915_v28, %v5048_v7  ;;  %v871_v34 = vpop.f32.mrb[3].mxu1  ;;  %4031 = vrot.lane.b32.xlu0 %v4030_v23, %s4622_s12 }
 0x298   : > { %1829 = vst.msk [vmem:[%s5060_s30 + $0x4] sm:$0xf] %vm1347_vm0, %v3753_v26  ;;  %v3816_v14 = vpack.c.bf16 %v869_v27, %v869_v27  ;;  %v872_v49 = vadd.f32 %v871_v34, %v5048_v7  ;;  %v765_v55 = vpop.f32.mrb[4].mxu0 }
 0x299   : > { %2310 = vst.msk [vmem:[%s5075_s9 + $0x8] sm:$0xf] %vm1347_vm0, %v3818_v30  ;;  %v3819_v15 = vpack.c.bf16 %v880_v31, %v880_v31  ;;  %v766_v35 = vadd.f32 %v765_v55, %v5040_v0  ;;  %v767_v36 = vpop.f32.mrb[5].mxu0  ;;  %v4060_v37 = vpack.i.bf16 %v880_v31, %v877_v21 }
 0x29a   : > { %2308 = vst.msk [vmem:[%s5075_s9] sm:$0xf] %vm1347_vm0, %v3816_v14  ;;  %v3817_v38 = vpack.c.bf16 %v872_v49, %v872_v49  ;;  %v768_v40 = vadd.f32 %v767_v36, %v5042_v4  ;;  %v769_v42 = vpop.f32.mrb[6].mxu0  ;;  %v5083_v56 = vpack.i.bf16 %v872_v49, %v869_v27 }
 0x29b   : > { %2311 = vst.msk [vmem:[%s5075_s9 + $0xc] sm:$0xf] %vm1347_vm0, %v3819_v15  ;;  %v3690_v43 = vpack.c.bf16 %v766_v35, %v766_v35  ;;  %v770_v44 = vadd.f32 %v769_v42, %v5040_v0  ;;  %4061 = vrot.lane.b32.xlu1 %v4060_v37, %s4622_s12  ;;  %v771_v32 = vpop.f32.mrb[7].mxu0  ;;  %4036 = vrot.lane.b32.xlu0 %v4030_v23, %s4623_s15 }
 0x29c   : > { %2309 = vst.msk [vmem:[%s5075_s9 + $0x4] sm:$0xf] %vm1347_vm0, %v3817_v38  ;;  %v3754_v2 = vpack.c.bf16 %v768_v40, %v768_v40  ;;  %v772_v45 = vadd.f32 %v771_v32, %v5042_v4  ;;  %v3918_v48 = vpop.f32.mrb[4].mxu1 }
 0x29d   : > { %1350 = vst.msk [vmem:[%s5054_s29 + $0x8] sm:$0xf] %vm1347_vm0, %v3690_v43  ;;  %v3691_v50 = vpack.c.bf16 %v770_v44, %v770_v44  ;;  %v893_v51 = vadd.f32 %v3918_v48, %v5048_v7  ;;  %v884_v25 = vpop.f32.mrb[5].mxu1  ;;  %v5096_v3 = vpack.i.bf16 %v770_v44, %v766_v35 }
 0x29e   : > { %1830 = vst.msk [vmem:[%s5060_s30 + $0x8] sm:$0xf] %vm1347_vm0, %v3754_v2  ;;  %v3755_v10 = vpack.c.bf16 %v772_v45, %v772_v45  ;;  %v885_v52 = vadd.f32 %v884_v25, %v5048_v7  ;;  %v3919_v53 = vpop.f32.mrb[6].mxu1  ;;  %v5101_v54 = vpack.i.bf16 %v772_v45, %v768_v40 }
 0x29f   : > { %1351 = vst.msk [vmem:[%s5054_s29 + $0xc] sm:$0xf] %vm1347_vm0, %v3691_v50  ;;  %v3822_v57 = vpack.c.bf16 %v893_v51, %v893_v51  ;;  %v896_v58 = vadd.f32 %v3919_v53, %v5048_v7  ;;  %4066 = vrot.lane.b32.xlu1 %v4060_v37, %s4623_s15  ;;  %v887_v59 = vpop.f32.mrb[7].mxu1  ;;  %4041 = vrot.lane.b32.xlu0 %v4030_v23, %s4624_s14 }
 0x2a0   : > { %1831 = vst.msk [vmem:[%s5060_s30 + $0xc] sm:$0xf] %vm1347_vm0, %v3755_v10  ;;  %v3820_v11 = vpack.c.bf16 %v885_v52, %v885_v52  ;;  %v888_v60 = vadd.f32 %v887_v59, %v5048_v7  ;;  %v775_v12 = vpop.f32.mrb[8].mxu0 }
 0x2a1   : > { %2314 = vst.msk [vmem:[%s5075_s9 + $0x18] sm:$0xf] %vm1347_vm0, %v3822_v57  ;;  %v3823_v61 = vpack.c.bf16 %v896_v58, %v896_v58  ;;  %v776_v62 = vadd.f32 %v775_v12, %v5040_v0  ;;  %v777_v13 = vpop.f32.mrb[9].mxu0  ;;  %v5114_v22 = vpack.i.bf16 %v896_v58, %v893_v51 }
 0x2a2   : > { %2312 = vst.msk [vmem:[%s5075_s9 + $0x10] sm:$0xf] %vm1347_vm0, %v3820_v11  ;;  %v3821_v63 = vpack.c.bf16 %v888_v60, %v888_v60  ;;  %v778_v33 = vadd.f32 %v777_v13, %v5042_v4  ;;  %v779_v24 = vpop.f32.mrb[10].mxu0  ;;  %v5119_v1 = vpack.i.bf16 %v888_v60, %v885_v52 }
 0x2a3   : > { %2315 = vst.msk [vmem:[%s5075_s9 + $0x1c] sm:$0xf] %vm1347_vm0, %v3823_v61  ;;  %v3692_v5 = vpack.c.bf16 %v776_v62, %v776_v62  ;;  %v780_v39 = vadd.f32 %v779_v24, %v5040_v0  ;;  %4071 = vrot.lane.b32.xlu1 %v4060_v37, %s4624_s14  ;;  %v781_v6 = vpop.f32.mrb[11].mxu0  ;;  %4046 = vrot.lane.b32.xlu0 %v5065_v29, %s4622_s12 }
 0x2a4   : > { %2313 = vst.msk [vmem:[%s5075_s9 + $0x14] sm:$0xf] %vm1347_vm0, %v3821_v63  ;;  %v3756_v46 = vpack.c.bf16 %v778_v33, %v778_v33  ;;  %v782_v8 = vadd.f32 %v781_v6, %v5042_v4  ;;  %v3922_v9 = vpop.f32.mrb[8].mxu1 }
 0x2a5   : > { %1352 = vst.msk [vmem:[%s5054_s29 + $0x10] sm:$0xf] %vm1347_vm0, %v3692_v5  ;;  %v3693_v16 = vpack.c.bf16 %v780_v39, %v780_v39  ;;  %v909_v17 = vadd.f32 %v3922_v9, %v5048_v7  ;;  %v900_v18 = vpop.f32.mrb[9].mxu1  ;;  %v5133_v41 = vpack.i.bf16 %v780_v39, %v776_v62 }
 0x2a6   : > { %1832 = vst.msk [vmem:[%s5060_s30 + $0x10] sm:$0xf] %vm1347_vm0, %v3756_v46  ;;  %v3757_v19 = vpack.c.bf16 %v782_v8, %v782_v8  ;;  %v901_v20 = vadd.f32 %v900_v18, %v5048_v7  ;;  %v3923_v21 = vpop.f32.mrb[10].mxu1  ;;  %v5138_v47 = vpack.i.bf16 %v782_v8, %v778_v33 }
 0x2a7   : > { %1353 = vst.msk [vmem:[%s5054_s29 + $0x14] sm:$0xf] %vm1347_vm0, %v3693_v16  ;;  %v3826_v23 = vpack.c.bf16 %v909_v17, %v909_v17  ;;  %v912_v26 = vadd.f32 %v3923_v21, %v5048_v7  ;;  %v903_v27 = vpop.f32.mrb[11].mxu1  ;;  %4091 = vrot.lane.b32.xlu1 %v5096_v3, %s4622_s12  ;;  %4051 = vrot.lane.b32.xlu0 %v5065_v29, %s4623_s15 }
 0x2a8   : > { %1833 = vst.msk [vmem:[%s5060_s30 + $0x14] sm:$0xf] %vm1347_vm0, %v3757_v19  ;;  %v3824_v28 = vpack.c.bf16 %v901_v20, %v901_v20  ;;  %v904_v30 = vadd.f32 %v903_v27, %v5048_v7  ;;  %v785_v31 = vpop.f32.mrb[12].mxu0 }
 0x2a9   : > { %2318 = vst.msk [vmem:[%s5075_s9 + $0x28] sm:$0xf] %vm1347_vm0, %v3826_v23  ;;  %v3827_v34 = vpack.c.bf16 %v912_v26, %v912_v26  ;;  %v786_v14 = vadd.f32 %v785_v31, %v5040_v0  ;;  %v787_v49 = vpop.f32.mrb[13].mxu0  ;;  %v5153_v55 = vpack.i.bf16 %v912_v26, %v909_v17 }
 0x2aa   : > { %2316 = vst.msk [vmem:[%s5075_s9 + $0x20] sm:$0xf] %vm1347_vm0, %v3824_v28  ;;  %v3825_v15 = vpack.c.bf16 %v904_v30, %v904_v30  ;;  %v788_v35 = vadd.f32 %v787_v49, %v5042_v4  ;;  %v789_v36 = vpop.f32.mrb[14].mxu0  ;;  %v5158_v37 = vpack.i.bf16 %v904_v30, %v901_v20 }
 0x2ab   : > { %2319 = vst.msk [vmem:[%s5075_s9 + $0x2c] sm:$0xf] %vm1347_vm0, %v3827_v34  ;;  %v3694_v38 = vpack.c.bf16 %v786_v14, %v786_v14  ;;  %v790_v40 = vadd.f32 %v789_v36, %v5040_v0  ;;  %v791_v42 = vpop.f32.mrb[15].mxu0  ;;  %4096 = vrot.lane.b32.xlu1 %v5096_v3, %s4623_s15  ;;  %4056 = vrot.lane.b32.xlu0 %v5065_v29, %s4624_s14 }
 0x2ac   : > { %2317 = vst.msk [vmem:[%s5075_s9 + $0x24] sm:$0xf] %vm1347_vm0, %v3825_v15  ;;  %v3758_v43 = vpack.c.bf16 %v788_v35, %v788_v35  ;;  %v792_v44 = vadd.f32 %v791_v42, %v5042_v4  ;;  %v3926_v32 = vpop.f32.mrb[12].mxu1 }
 0x2ad   : > { %1354 = vst.msk [vmem:[%s5054_s29 + $0x18] sm:$0xf] %vm1347_vm0, %v3694_v38  ;;  %v3695_v2 = vpack.c.bf16 %v790_v40, %v790_v40  ;;  %v925_v45 = vadd.f32 %v3926_v32, %v5048_v7  ;;  %v916_v48 = vpop.f32.mrb[13].mxu1  ;;  %v5173_v50 = vpack.i.bf16 %v790_v40, %v786_v14 }
 0x2ae   : > { %1834 = vst.msk [vmem:[%s5060_s30 + $0x18] sm:$0xf] %vm1347_vm0, %v3758_v43  ;;  %v3759_v51 = vpack.c.bf16 %v792_v44, %v792_v44  ;;  %v917_v29 = vadd.f32 %v916_v48, %v5048_v7  ;;  %v3927_v25 = vpop.f32.mrb[14].mxu1  ;;  %v5178_v10 = vpack.i.bf16 %v792_v44, %v788_v35 }
 0x2af   : > { %1355 = vst.msk [vmem:[%s5054_s29 + $0x1c] sm:$0xf] %vm1347_vm0, %v3695_v2  ;;  %v3830_v52 = vpack.c.bf16 %v925_v45, %v925_v45  ;;  %v928_v53 = vadd.f32 %v3927_v25, %v5048_v7  ;;  %v919_v57 = vpop.f32.mrb[15].mxu1  ;;  %4101 = vrot.lane.b32.xlu1 %v5096_v3, %s4624_s14  ;;  %4076 = vrot.lane.b32.xlu0 %v5083_v56, %s4622_s12 }
 0x2b0   : > { %1835 = vst.msk [vmem:[%s5060_s30 + $0x1c] sm:$0xf] %vm1347_vm0, %v3759_v51  ;;  %v3828_v58 = vpack.c.bf16 %v917_v29, %v917_v29  ;;  %v920_v59 = vadd.f32 %v919_v57, %v5048_v7  ;;  %v795_v11 = vpop.f32.mrb[16].mxu0 }
 0x2b1   : > { %2322 = vst.msk [vmem:[%s5075_s9 + $0x38] sm:$0xf] %vm1347_vm0, %v3830_v52  ;;  %v3831_v60 = vpack.c.bf16 %v928_v53, %v928_v53  ;;  %v796_v12 = vadd.f32 %v795_v11, %v5040_v0  ;;  %v797_v61 = vpop.f32.mrb[17].mxu0  ;;  %v5193_v62 = vpack.i.bf16 %v928_v53, %v925_v45 }
 0x2b2   : > { %2320 = vst.msk [vmem:[%s5075_s9 + $0x30] sm:$0xf] %vm1347_vm0, %v3828_v58  ;;  %v3829_v3 = vpack.c.bf16 %v920_v59, %v920_v59  ;;  %v798_v13 = vadd.f32 %v797_v61, %v5042_v4  ;;  %v799_v63 = vpop.f32.mrb[18].mxu0  ;;  %v5198_v33 = vpack.i.bf16 %v920_v59, %v917_v29 }
 0x2b3   : > { %2323 = vst.msk [vmem:[%s5075_s9 + $0x3c] sm:$0xf] %vm1347_vm0, %v3831_v60  ;;  %v3696_v7 = vpack.c.bf16 %v796_v12, %v796_v12  ;;  %v800_v24 = vadd.f32 %v799_v63, %v5040_v0  ;;  %v801_v5 = vpop.f32.mrb[19].mxu0  ;;  %4106 = vrot.lane.b32.xlu1 %v5101_v54, %s4622_s12  ;;  %4081 = vrot.lane.b32.xlu0 %v5083_v56, %s4623_s15 }
 0x2b4   : > { %2321 = vst.msk [vmem:[%s5075_s9 + $0x34] sm:$0xf] %vm1347_vm0, %v3829_v3  ;;  %v3760_v39 = vpack.c.bf16 %v798_v13, %v798_v13  ;;  %v802_v6 = vadd.f32 %v801_v5, %v5042_v4 }
 0x2b5   : > { %1356 = vst.msk [vmem:[%s5054_s29 + $0x20] sm:$0xf] %vm1347_vm0, %v3696_v7  ;;  %v3697_v46 = vpack.c.bf16 %v800_v24, %v800_v24  ;;  %v5212_v8 = vpack.i.bf16 %v800_v24, %v796_v12 }
 0x2b6   : > { %1836 = vst.msk [vmem:[%s5060_s30 + $0x20] sm:$0xf] %vm1347_vm0, %v3760_v39  ;;  %v3761_v9 = vpack.c.bf16 %v802_v6, %v802_v6  ;;  %v5216_v16 = vpack.i.bf16 %v802_v6, %v798_v13 }
 0x2b7   : > { %1357 = vst.msk [vmem:[%s5054_s29 + $0x24] sm:$0xf] %vm1347_vm0, %v3697_v46  ;;  %4111 = vrot.lane.b32.xlu1 %v5101_v54, %s4623_s15  ;;  %4086 = vrot.lane.b32.xlu0 %v5083_v56, %s4624_s14 }
 0x2b8   : > { %1837 = vst.msk [vmem:[%s5060_s30 + $0x24] sm:$0xf] %vm1347_vm0, %v3761_v9  ;;  %v805_v17 = vpop.f32.mrb[20].mxu0 }
 0x2b9   : > { %v806_v18 = vadd.f32 %v805_v17, %v5040_v0  ;;  %v807_v19 = vpop.f32.mrb[21].mxu0 }
 0x2ba   : > { %v808_v20 = vadd.f32 %v807_v19, %v5042_v4  ;;  %v809_v21 = vpop.f32.mrb[22].mxu0 }
 0x2bb   : > { %v3698_v23 = vpack.c.bf16 %v806_v18, %v806_v18  ;;  %v810_v26 = vadd.f32 %v809_v21, %v5040_v0  ;;  %v811_v27 = vpop.f32.mrb[23].mxu0  ;;  %4116 = vrot.lane.b32.xlu1 %v5101_v54, %s4624_s14  ;;  %4136 = vrot.lane.b32.xlu0 %v5119_v1, %s4622_s12 }
 0x2bc   : > { %v3762_v56 = vpack.c.bf16 %v808_v20, %v808_v20  ;;  %v812_v28 = vadd.f32 %v811_v27, %v5042_v4 }
 0x2bd   : > { %1358 = vst.msk [vmem:[%s5054_s29 + $0x28] sm:$0xf] %vm1347_vm0, %v3698_v23  ;;  %v3699_v30 = vpack.c.bf16 %v810_v26, %v810_v26  ;;  %v5236_v31 = vpack.i.bf16 %v810_v26, %v806_v18 }
 0x2be   : > { %1838 = vst.msk [vmem:[%s5060_s30 + $0x28] sm:$0xf] %vm1347_vm0, %v3762_v56  ;;  %v3763_v34 = vpack.c.bf16 %v812_v28, %v812_v28  ;;  %v5240_v14 = vpack.i.bf16 %v812_v28, %v808_v20 }
 0x2bf   : > { %1359 = vst.msk [vmem:[%s5054_s29 + $0x2c] sm:$0xf] %vm1347_vm0, %v3699_v30  ;;  %4121 = vrot.lane.b32.xlu1 %v5114_v22, %s4622_s12  ;;  %4141 = vrot.lane.b32.xlu0 %v5119_v1, %s4623_s15 }
 0x2c0   : > { %1839 = vst.msk [vmem:[%s5060_s30 + $0x2c] sm:$0xf] %vm1347_vm0, %v3763_v34  ;;  %v815_v54 = vpop.f32.mrb[24].mxu0 }
 0x2c1   : > { %v816_v49 = vadd.f32 %v815_v54, %v5040_v0  ;;  %v817_v15 = vpop.f32.mrb[25].mxu0 }
 0x2c2   : > { %v818_v35 = vadd.f32 %v817_v15, %v5042_v4  ;;  %v819_v36 = vpop.f32.mrb[26].mxu0 }
 0x2c3   : > { %v3700_v38 = vpack.c.bf16 %v816_v49, %v816_v49  ;;  %v820_v40 = vadd.f32 %v819_v36, %v5040_v0  ;;  %v821_v42 = vpop.f32.mrb[27].mxu0  ;;  %4126 = vrot.lane.b32.xlu1 %v5114_v22, %s4623_s15  ;;  %4146 = vrot.lane.b32.xlu0 %v5119_v1, %s4624_s14 }
 0x2c4   : > { %v3764_v43 = vpack.c.bf16 %v818_v35, %v818_v35  ;;  %v822_v44 = vadd.f32 %v821_v42, %v5042_v4 }
 0x2c5   : > { %1360 = vst.msk [vmem:[%s5054_s29 + $0x30] sm:$0xf] %vm1347_vm0, %v3700_v38  ;;  %v3701_v32 = vpack.c.bf16 %v820_v40, %v820_v40  ;;  %v5260_v2 = vpack.i.bf16 %v820_v40, %v816_v49 }
 0x2c6   : > { %1840 = vst.msk [vmem:[%s5060_s30 + $0x30] sm:$0xf] %vm1347_vm0, %v3764_v43  ;;  %v3765_v45 = vpack.c.bf16 %v822_v44, %v822_v44  ;;  %v5264_v48 = vpack.i.bf16 %v822_v44, %v818_v35 }
 0x2c7   : > { %1361 = vst.msk [vmem:[%s5054_s29 + $0x34] sm:$0xf] %vm1347_vm0, %v3701_v32  ;;  %4131 = vrot.lane.b32.xlu1 %v5114_v22, %s4624_s14  ;;  %4156 = vrot.lane.b32.xlu0 %v5133_v41, %s4623_s15 }
 0x2c8   : > { %1841 = vst.msk [vmem:[%s5060_s30 + $0x34] sm:$0xf] %vm1347_vm0, %v3765_v45  ;;  %v825_v1 = vpop.f32.mrb[28].mxu0 }
 0x2c9   : > { %v826_v51 = vadd.f32 %v825_v1, %v5040_v0  ;;  %v827_v29 = vpop.f32.mrb[29].mxu0 }
 0x2ca   : > { %v828_v25 = vadd.f32 %v827_v29, %v5042_v4  ;;  %v829_v52 = vpop.f32.mrb[30].mxu0 }
 0x2cb   : > { %v3702_v53 = vpack.c.bf16 %v826_v51, %v826_v51  ;;  %v830_v57 = vadd.f32 %v829_v52, %v5040_v0  ;;  %v831_v58 = vpop.f32.mrb[31].mxu0  ;;  %4151 = vrot.lane.b32.xlu1 %v5133_v41, %s4622_s12  ;;  %4161 = vrot.lane.b32.xlu0 %v5133_v41, %s4624_s14 }
 0x2cc   : > { %v3766_v22 = vpack.c.bf16 %v828_v25, %v828_v25  ;;  %v832_v59 = vadd.f32 %v831_v58, %v5042_v4 }
 0x2cd   : > { %1362 = vst.msk [vmem:[%s5054_s29 + $0x38] sm:$0xf] %vm1347_vm0, %v3702_v53  ;;  %v3703_v11 = vpack.c.bf16 %v830_v57, %v830_v57  ;;  %v5284_v60 = vpack.i.bf16 %v830_v57, %v826_v51 }
 0x2ce   : > { %1842 = vst.msk [vmem:[%s5060_s30 + $0x38] sm:$0xf] %vm1347_vm0, %v3766_v22  ;;  %v3767_v12 = vpack.c.bf16 %v832_v59, %v832_v59  ;;  %v5288_v61 = vpack.i.bf16 %v832_v59, %v828_v25 }
 0x2cf   : > { %1363 = vst.msk [vmem:[%s5054_s29 + $0x3c] sm:$0xf] %vm1347_vm0, %v3703_v11  ;;  %4181 = vrot.lane.b32.xlu1 %v5153_v55, %s4622_s12  ;;  %4166 = vrot.lane.b32.xlu0 %v5138_v47, %s4622_s12 }
 0x2d0   : > { %1843 = vst.msk [vmem:[%s5060_s30 + $0x3c] sm:$0xf] %vm1347_vm0, %v3767_v12 }
 0x2d3   : > { %4186 = vrot.lane.b32.xlu1 %v5153_v55, %s4623_s15  ;;  %4171 = vrot.lane.b32.xlu0 %v5138_v47, %s4623_s15 }
 0x2d7   : > { %4191 = vrot.lane.b32.xlu1 %v5153_v55, %s4624_s14  ;;  %4176 = vrot.lane.b32.xlu0 %v5138_v47, %s4624_s14 }
 0x2db   : > { %4211 = vrot.lane.b32.xlu1 %v5173_v50, %s4622_s12  ;;  %4196 = vrot.lane.b32.xlu0 %v5158_v37, %s4622_s12 }
 0x2df   : > { %4216 = vrot.lane.b32.xlu1 %v5173_v50, %s4623_s15  ;;  %4201 = vrot.lane.b32.xlu0 %v5158_v37, %s4623_s15 }
 0x2e3   : > { %4221 = vrot.lane.b32.xlu1 %v5173_v50, %s4624_s14  ;;  %4206 = vrot.lane.b32.xlu0 %v5158_v37, %s4624_s14 }
 0x2e7   : > { %4226 = vrot.lane.b32.xlu1 %v5178_v10, %s4622_s12  ;;  %4251 = vrot.lane.b32.xlu0 %v5198_v33, %s4622_s12 }
 0x2eb   : > { %4231 = vrot.lane.b32.xlu1 %v5178_v10, %s4623_s15  ;;  %4256 = vrot.lane.b32.xlu0 %v5198_v33, %s4623_s15 }
 0x2ef   : > { %4236 = vrot.lane.b32.xlu1 %v5178_v10, %s4624_s14  ;;  %4261 = vrot.lane.b32.xlu0 %v5212_v8, %s4622_s12 }
 0x2f3   : > { %4241 = vrot.lane.b32.xlu1 %v5193_v62, %s4622_s12  ;;  %4266 = vrot.lane.b32.xlu0 %v5212_v8, %s4623_s15 }
 0x2f7   : > { %4246 = vrot.lane.b32.xlu1 %v5193_v62, %s4623_s15  ;;  %4271 = vrot.lane.b32.xlu0 %v5212_v8, %s4624_s14 }
 0x2fb   : > { %4291 = vrot.lane.b32.xlu1 %v5236_v31, %s4622_s12  ;;  %4276 = vrot.lane.b32.xlu0 %v5216_v16, %s4622_s12 }
 0x2ff   : > { %4296 = vrot.lane.b32.xlu1 %v5236_v31, %s4623_s15  ;;  %4281 = vrot.lane.b32.xlu0 %v5216_v16, %s4623_s15 }
 0x303   : > { %4301 = vrot.lane.b32.xlu1 %v5236_v31, %s4624_s14  ;;  %4286 = vrot.lane.b32.xlu0 %v5216_v16, %s4624_s14 }
 0x307   : > { %4306 = vrot.lane.b32.xlu1 %v5240_v14, %s4622_s12  ;;  %4321 = vrot.lane.b32.xlu0 %v5260_v2, %s4622_s12 }
 0x309   : > { %v4032_v0 = vpop.permute.xlu0 %4031 }
 0x30a   : > { %v4034_v4 = vunpack.i.h.bf16 %v4032_v0  ;;  %v4033_v41 = vunpack.i.l.bf16 %v4032_v0 }
 0x30b   : > { %4311 = vrot.lane.b32.xlu1 %v5240_v14, %s4623_s15  ;;  %4326 = vrot.lane.b32.xlu0 %v5260_v2, %s4623_s15 }
 0x30c   : > { %v3705_v47 = vpack.c.bf16 %v4034_v4, %v4034_v4  ;;  %v3704_v55 = vpack.c.bf16 %v4033_v41, %v4033_v41 }
 0x30d   : > { %v4062_v37 = vpop.permute.xlu1 %4061  ;;  %v4037_v50 = vpop.permute.xlu0 %4036 }
 0x30e   : > { %1365 = vst.msk [vmem:[%s5054_s29 + $0x44] sm:$0xf] %vm1347_vm0, %v3705_v47  ;;  %1364 = vst.msk [vmem:[%s5054_s29 + $0x40] sm:$0xf] %vm1347_vm0, %v3704_v55  ;;  %v4064_v10 = vunpack.i.h.bf16 %v4062_v37  ;;  %v4063_v3 = vunpack.i.l.bf16 %v4062_v37  ;;  %v4039_v13 = vunpack.i.h.bf16 %v4037_v50  ;;  %v4038_v63 = vunpack.i.l.bf16 %v4037_v50 }
 0x30f   : > { %4316 = vrot.lane.b32.xlu1 %v5240_v14, %s4624_s14  ;;  %4331 = vrot.lane.b32.xlu0 %v5260_v2, %s4624_s14 }
 0x310   : > { %v3835_v7 = vpack.c.bf16 %v4064_v10, %v4064_v10  ;;  %v3834_v24 = vpack.c.bf16 %v4063_v3, %v4063_v3  ;;  %v3721_v5 = vpack.c.bf16 %v4039_v13, %v4039_v13  ;;  %v3720_v39 = vpack.c.bf16 %v4038_v63, %v4038_v63 }
 0x311   : > { %v4067_v6 = vpop.permute.xlu1 %4066  ;;  %v4042_v46 = vpop.permute.xlu0 %4041 }
 0x312   : > { %2327 = vst.msk [vmem:[%s5075_s9 + $0x4c] sm:$0xf] %vm1347_vm0, %v3835_v7  ;;  %2326 = vst.msk [vmem:[%s5075_s9 + $0x48] sm:$0xf] %vm1347_vm0, %v3834_v24  ;;  %v4069_v8 = vunpack.i.h.bf16 %v4067_v6  ;;  %v4068_v9 = vunpack.i.l.bf16 %v4067_v6  ;;  %v4044_v16 = vunpack.i.h.bf16 %v4042_v46  ;;  %v4043_v17 = vunpack.i.l.bf16 %v4042_v46 }
 0x313   : > { %1381 = vst.msk [vmem:[%s5054_s29 + $0x84] sm:$0xf] %vm1347_vm0, %v3721_v5  ;;  %1380 = vst.msk [vmem:[%s5054_s29 + $0x80] sm:$0xf] %vm1347_vm0, %v3720_v39  ;;  %4351 = vrot.lane.b32.xlu1 %v5284_v60, %s4622_s12  ;;  %4336 = vrot.lane.b32.xlu0 %v5264_v48, %s4622_s12 }
 0x314   : > { %v3851_v18 = vpack.c.bf16 %v4069_v8, %v4069_v8  ;;  %v3850_v19 = vpack.c.bf16 %v4068_v9, %v4068_v9  ;;  %v3737_v20 = vpack.c.bf16 %v4044_v16, %v4044_v16  ;;  %v3736_v21 = vpack.c.bf16 %v4043_v17, %v4043_v17 }
 0x315   : > { %v4072_v23 = vpop.permute.xlu1 %4071  ;;  %v4047_v26 = vpop.permute.xlu0 %4046 }
 0x316   : > { %2343 = vst.msk [vmem:[%s5075_s9 + $0x8c] sm:$0xf] %vm1347_vm0, %v3851_v18  ;;  %2342 = vst.msk [vmem:[%s5075_s9 + $0x88] sm:$0xf] %vm1347_vm0, %v3850_v19  ;;  %v4074_v27 = vunpack.i.h.bf16 %v4072_v23  ;;  %v4073_v56 = vunpack.i.l.bf16 %v4072_v23  ;;  %v4049_v28 = vunpack.i.h.bf16 %v4047_v26  ;;  %v4048_v30 = vunpack.i.l.bf16 %v4047_v26 }
 0x317   : > { %1397 = vst.msk [vmem:[%s5054_s29 + $0xc4] sm:$0xf] %vm1347_vm0, %v3737_v20  ;;  %1396 = vst.msk [vmem:[%s5054_s29 + $0xc0] sm:$0xf] %vm1347_vm0, %v3736_v21  ;;  %4356 = vrot.lane.b32.xlu1 %v5284_v60, %s4623_s15  ;;  %4341 = vrot.lane.b32.xlu0 %v5264_v48, %s4623_s15 }
 0x318   : > { %v3867_v31 = vpack.c.bf16 %v4074_v27, %v4074_v27  ;;  %v3866_v34 = vpack.c.bf16 %v4073_v56, %v4073_v56  ;;  %v3769_v14 = vpack.c.bf16 %v4049_v28, %v4049_v28  ;;  %v3768_v54 = vpack.c.bf16 %v4048_v30, %v4048_v30 }
 0x319   : > { %v4092_v49 = vpop.permute.xlu1 %4091  ;;  %v4052_v15 = vpop.permute.xlu0 %4051 }
 0x31a   : > { %2359 = vst.msk [vmem:[%s5075_s9 + $0xcc] sm:$0xf] %vm1347_vm0, %v3867_v31  ;;  %2358 = vst.msk [vmem:[%s5075_s9 + $0xc8] sm:$0xf] %vm1347_vm0, %v3866_v34  ;;  %v4094_v35 = vunpack.i.h.bf16 %v4092_v49  ;;  %v4093_v36 = vunpack.i.l.bf16 %v4092_v49  ;;  %v4054_v38 = vunpack.i.h.bf16 %v4052_v15  ;;  %v4053_v40 = vunpack.i.l.bf16 %v4052_v15 }
 0x31b   : > { %1845 = vst.msk [vmem:[%s5060_s30 + $0x44] sm:$0xf] %vm1347_vm0, %v3769_v14  ;;  %1844 = vst.msk [vmem:[%s5060_s30 + $0x40] sm:$0xf] %vm1347_vm0, %v3768_v54  ;;  %4361 = vrot.lane.b32.xlu1 %v5284_v60, %s4624_s14  ;;  %4346 = vrot.lane.b32.xlu0 %v5264_v48, %s4624_s14 }
 0x31c   : > { %v3707_v42 = vpack.c.bf16 %v4094_v35, %v4094_v35  ;;  %v3706_v43 = vpack.c.bf16 %v4093_v36, %v4093_v36  ;;  %v3785_v44 = vpack.c.bf16 %v4054_v38, %v4054_v38  ;;  %v3784_v32 = vpack.c.bf16 %v4053_v40, %v4053_v40 }
 0x31d   : > { %v4097_v2 = vpop.permute.xlu1 %4096  ;;  %v4057_v45 = vpop.permute.xlu0 %4056 }
 0x31e   : > { %1367 = vst.msk [vmem:[%s5054_s29 + $0x4c] sm:$0xf] %vm1347_vm0, %v3707_v42  ;;  %1366 = vst.msk [vmem:[%s5054_s29 + $0x48] sm:$0xf] %vm1347_vm0, %v3706_v43  ;;  %v4099_v1 = vunpack.i.h.bf16 %v4097_v2  ;;  %v4098_v48 = vunpack.i.l.bf16 %v4097_v2  ;;  %v4059_v51 = vunpack.i.h.bf16 %v4057_v45  ;;  %v4058_v29 = vunpack.i.l.bf16 %v4057_v45 }
 0x31f   : > { %1861 = vst.msk [vmem:[%s5060_s30 + $0x84] sm:$0xf] %vm1347_vm0, %v3785_v44  ;;  %1860 = vst.msk [vmem:[%s5060_s30 + $0x80] sm:$0xf] %vm1347_vm0, %v3784_v32  ;;  %4366 = vrot.lane.b32.xlu1 %v5288_v61, %s4622_s12  ;;  %4381 = vrot.lane.b32.xlu0 %v5198_v33, %s4624_s14 }
 0x320   : > { %v3723_v25 = vpack.c.bf16 %v4099_v1, %v4099_v1  ;;  %v3722_v52 = vpack.c.bf16 %v4098_v48, %v4098_v48  ;;  %v3801_v53 = vpack.c.bf16 %v4059_v51, %v4059_v51  ;;  %v3800_v57 = vpack.c.bf16 %v4058_v29, %v4058_v29 }
 0x321   : > { %v4102_v58 = vpop.permute.xlu1 %4101  ;;  %v4077_v22 = vpop.permute.xlu0 %4076 }
 0x322   : > { %1383 = vst.msk [vmem:[%s5054_s29 + $0x8c] sm:$0xf] %vm1347_vm0, %v3723_v25  ;;  %1382 = vst.msk [vmem:[%s5054_s29 + $0x88] sm:$0xf] %vm1347_vm0, %v3722_v52  ;;  %v4104_v59 = vunpack.i.h.bf16 %v4102_v58  ;;  %v4103_v33 = vunpack.i.l.bf16 %v4102_v58  ;;  %v4079_v11 = vunpack.i.h.bf16 %v4077_v22  ;;  %v4078_v60 = vunpack.i.l.bf16 %v4077_v22 }
 0x323   : > { %1877 = vst.msk [vmem:[%s5060_s30 + $0xc4] sm:$0xf] %vm1347_vm0, %v3801_v53  ;;  %1876 = vst.msk [vmem:[%s5060_s30 + $0xc0] sm:$0xf] %vm1347_vm0, %v3800_v57  ;;  %4371 = vrot.lane.b32.xlu1 %v5288_v61, %s4623_s15 }
 0x324   : > { %v3739_v12 = vpack.c.bf16 %v4104_v59, %v4104_v59  ;;  %v3738_v0 = vpack.c.bf16 %v4103_v33, %v4103_v33  ;;  %v3833_v4 = vpack.c.bf16 %v4079_v11, %v4079_v11  ;;  %v3832_v41 = vpack.c.bf16 %v4078_v60, %v4078_v60 }
 0x325   : > { %v4107_v47 = vpop.permute.xlu1 %4106  ;;  %v4082_v55 = vpop.permute.xlu0 %4081 }
 0x326   : > { %1399 = vst.msk [vmem:[%s5054_s29 + $0xcc] sm:$0xf] %vm1347_vm0, %v3739_v12  ;;  %1398 = vst.msk [vmem:[%s5054_s29 + $0xc8] sm:$0xf] %vm1347_vm0, %v3738_v0  ;;  %v4109_v37 = vunpack.i.h.bf16 %v4107_v47  ;;  %v4108_v50 = vunpack.i.l.bf16 %v4107_v47  ;;  %v4084_v10 = vunpack.i.h.bf16 %v4082_v55  ;;  %v4083_v3 = vunpack.i.l.bf16 %v4082_v55 }
 0x327   : > { %2325 = vst.msk [vmem:[%s5075_s9 + $0x44] sm:$0xf] %vm1347_vm0, %v3833_v4  ;;  %2324 = vst.msk [vmem:[%s5075_s9 + $0x40] sm:$0xf] %vm1347_vm0, %v3832_v41  ;;  %4376 = vrot.lane.b32.xlu1 %v5288_v61, %s4624_s14 }
 0x328   : > { %v3771_v13 = vpack.c.bf16 %v4109_v37, %v4109_v37  ;;  %v3770_v63 = vpack.c.bf16 %v4108_v50, %v4108_v50  ;;  %v3849_v7 = vpack.c.bf16 %v4084_v10, %v4084_v10  ;;  %v3848_v24 = vpack.c.bf16 %v4083_v3, %v4083_v3 }
 0x329   : > { %v4112_v5 = vpop.permute.xlu1 %4111  ;;  %v4087_v39 = vpop.permute.xlu0 %4086 }
 0x32a   : > { %1847 = vst.msk [vmem:[%s5060_s30 + $0x4c] sm:$0xf] %vm1347_vm0, %v3771_v13  ;;  %1846 = vst.msk [vmem:[%s5060_s30 + $0x48] sm:$0xf] %vm1347_vm0, %v3770_v63  ;;  %v4114_v6 = vunpack.i.h.bf16 %v4112_v5  ;;  %v4113_v61 = vunpack.i.l.bf16 %v4112_v5  ;;  %v4089_v46 = vunpack.i.h.bf16 %v4087_v39  ;;  %v4088_v8 = vunpack.i.l.bf16 %v4087_v39 }
 0x32b   : > { %2341 = vst.msk [vmem:[%s5075_s9 + $0x84] sm:$0xf] %vm1347_vm0, %v3849_v7  ;;  %2340 = vst.msk [vmem:[%s5075_s9 + $0x80] sm:$0xf] %vm1347_vm0, %v3848_v24  ;;  %4386 = vrot.lane.b32.xlu1 %v5193_v62, %s4624_s14 }
 0x32c   : > { %v3787_v9 = vpack.c.bf16 %v4114_v6, %v4114_v6  ;;  %v3786_v16 = vpack.c.bf16 %v4113_v61, %v4113_v61  ;;  %v3865_v17 = vpack.c.bf16 %v4089_v46, %v4089_v46  ;;  %v3864_v18 = vpack.c.bf16 %v4088_v8, %v4088_v8 }
 0x32d   : > { %v4117_v19 = vpop.permute.xlu1 %4116  ;;  %v4137_v20 = vpop.permute.xlu0 %4136 }
 0x32e   : > { %1863 = vst.msk [vmem:[%s5060_s30 + $0x8c] sm:$0xf] %vm1347_vm0, %v3787_v9  ;;  %1862 = vst.msk [vmem:[%s5060_s30 + $0x88] sm:$0xf] %vm1347_vm0, %v3786_v16  ;;  %v4119_v21 = vunpack.i.h.bf16 %v4117_v19  ;;  %v4118_v62 = vunpack.i.l.bf16 %v4117_v19  ;;  %v4139_v23 = vunpack.i.h.bf16 %v4137_v20  ;;  %v4138_v26 = vunpack.i.l.bf16 %v4137_v20 }
 0x32f   : > { %2357 = vst.msk [vmem:[%s5075_s9 + $0xc4] sm:$0xf] %vm1347_vm0, %v3865_v17  ;;  %2356 = vst.msk [vmem:[%s5075_s9 + $0xc0] sm:$0xf] %vm1347_vm0, %v3864_v18 }
 0x330   : > { %v3803_v27 = vpack.c.bf16 %v4119_v21, %v4119_v21  ;;  %v3802_v56 = vpack.c.bf16 %v4118_v62, %v4118_v62  ;;  %v3837_v28 = vpack.c.bf16 %v4139_v23, %v4139_v23  ;;  %v3836_v30 = vpack.c.bf16 %v4138_v26, %v4138_v26 }
 0x331   : > { %v4122_v31 = vpop.permute.xlu1 %4121  ;;  %v4142_v34 = vpop.permute.xlu0 %4141 }
 0x332   : > { %1879 = vst.msk [vmem:[%s5060_s30 + $0xcc] sm:$0xf] %vm1347_vm0, %v3803_v27  ;;  %1878 = vst.msk [vmem:[%s5060_s30 + $0xc8] sm:$0xf] %vm1347_vm0, %v3802_v56  ;;  %v4124_v14 = vunpack.i.h.bf16 %v4122_v31  ;;  %v4123_v54 = vunpack.i.l.bf16 %v4122_v31  ;;  %v4144_v49 = vunpack.i.h.bf16 %v4142_v34  ;;  %v4143_v15 = vunpack.i.l.bf16 %v4142_v34 }
 0x333   : > { %2329 = vst.msk [vmem:[%s5075_s9 + $0x54] sm:$0xf] %vm1347_vm0, %v3837_v28  ;;  %2328 = vst.msk [vmem:[%s5075_s9 + $0x50] sm:$0xf] %vm1347_vm0, %v3836_v30 }
 0x334   : > { %v3839_v35 = vpack.c.bf16 %v4124_v14, %v4124_v14  ;;  %v3838_v36 = vpack.c.bf16 %v4123_v54, %v4123_v54  ;;  %v3853_v38 = vpack.c.bf16 %v4144_v49, %v4144_v49  ;;  %v3852_v40 = vpack.c.bf16 %v4143_v15, %v4143_v15 }
 0x335   : > { %v4127_v42 = vpop.permute.xlu1 %4126  ;;  %v4147_v43 = vpop.permute.xlu0 %4146 }
 0x336   : > { %2331 = vst.msk [vmem:[%s5075_s9 + $0x5c] sm:$0xf] %vm1347_vm0, %v3839_v35  ;;  %2330 = vst.msk [vmem:[%s5075_s9 + $0x58] sm:$0xf] %vm1347_vm0, %v3838_v36  ;;  %v4129_v44 = vunpack.i.h.bf16 %v4127_v42  ;;  %v4128_v32 = vunpack.i.l.bf16 %v4127_v42  ;;  %v4149_v2 = vunpack.i.h.bf16 %v4147_v43  ;;  %v4148_v45 = vunpack.i.l.bf16 %v4147_v43 }
 0x337   : > { %2345 = vst.msk [vmem:[%s5075_s9 + $0x94] sm:$0xf] %vm1347_vm0, %v3853_v38  ;;  %2344 = vst.msk [vmem:[%s5075_s9 + $0x90] sm:$0xf] %vm1347_vm0, %v3852_v40 }
 0x338   : > { %v3855_v1 = vpack.c.bf16 %v4129_v44, %v4129_v44  ;;  %v3854_v48 = vpack.c.bf16 %v4128_v32, %v4128_v32  ;;  %v3869_v51 = vpack.c.bf16 %v4149_v2, %v4149_v2  ;;  %v3868_v29 = vpack.c.bf16 %v4148_v45, %v4148_v45 }
 0x339   : > { %v4132_v25 = vpop.permute.xlu1 %4131  ;;  %v4157_v52 = vpop.permute.xlu0 %4156 }
 0x33a   : > { %2347 = vst.msk [vmem:[%s5075_s9 + $0x9c] sm:$0xf] %vm1347_vm0, %v3855_v1  ;;  %2346 = vst.msk [vmem:[%s5075_s9 + $0x98] sm:$0xf] %vm1347_vm0, %v3854_v48  ;;  %v4134_v53 = vunpack.i.h.bf16 %v4132_v25  ;;  %v4133_v57 = vunpack.i.l.bf16 %v4132_v25  ;;  %v4159_v58 = vunpack.i.h.bf16 %v4157_v52  ;;  %v4158_v22 = vunpack.i.l.bf16 %v4157_v52 }
 0x33b   : > { %2361 = vst.msk [vmem:[%s5075_s9 + $0xd4] sm:$0xf] %vm1347_vm0, %v3869_v51  ;;  %2360 = vst.msk [vmem:[%s5075_s9 + $0xd0] sm:$0xf] %vm1347_vm0, %v3868_v29 }
 0x33c   : > { %v3871_v59 = vpack.c.bf16 %v4134_v53, %v4134_v53  ;;  %v3870_v33 = vpack.c.bf16 %v4133_v57, %v4133_v57  ;;  %v3725_v11 = vpack.c.bf16 %v4159_v58, %v4159_v58  ;;  %v3724_v60 = vpack.c.bf16 %v4158_v22, %v4158_v22 }
 0x33d   : > { %v4152_v12 = vpop.permute.xlu1 %4151  ;;  %v4162_v0 = vpop.permute.xlu0 %4161 }
 0x33e   : > { %2363 = vst.msk [vmem:[%s5075_s9 + $0xdc] sm:$0xf] %vm1347_vm0, %v3871_v59  ;;  %2362 = vst.msk [vmem:[%s5075_s9 + $0xd8] sm:$0xf] %vm1347_vm0, %v3870_v33  ;;  %v4154_v4 = vunpack.i.h.bf16 %v4152_v12  ;;  %v4153_v41 = vunpack.i.l.bf16 %v4152_v12  ;;  %v4164_v47 = vunpack.i.h.bf16 %v4162_v0  ;;  %v4163_v55 = vunpack.i.l.bf16 %v4162_v0 }
 0x33f   : > { %1385 = vst.msk [vmem:[%s5054_s29 + $0x94] sm:$0xf] %vm1347_vm0, %v3725_v11  ;;  %1384 = vst.msk [vmem:[%s5054_s29 + $0x90] sm:$0xf] %vm1347_vm0, %v3724_v60 }
 0x340   : > { %v3709_v37 = vpack.c.bf16 %v4154_v4, %v4154_v4  ;;  %v3708_v50 = vpack.c.bf16 %v4153_v41, %v4153_v41  ;;  %v3741_v10 = vpack.c.bf16 %v4164_v47, %v4164_v47  ;;  %v3740_v3 = vpack.c.bf16 %v4163_v55, %v4163_v55 }
 0x341   : > { %v4182_v13 = vpop.permute.xlu1 %4181  ;;  %v4167_v63 = vpop.permute.xlu0 %4166 }
 0x342   : > { %1369 = vst.msk [vmem:[%s5054_s29 + $0x54] sm:$0xf] %vm1347_vm0, %v3709_v37  ;;  %1368 = vst.msk [vmem:[%s5054_s29 + $0x50] sm:$0xf] %vm1347_vm0, %v3708_v50  ;;  %v4184_v7 = vunpack.i.h.bf16 %v4182_v13  ;;  %v4183_v24 = vunpack.i.l.bf16 %v4182_v13  ;;  %v4169_v5 = vunpack.i.h.bf16 %v4167_v63  ;;  %v4168_v39 = vunpack.i.l.bf16 %v4167_v63 }
 0x343   : > { %1401 = vst.msk [vmem:[%s5054_s29 + $0xd4] sm:$0xf] %vm1347_vm0, %v3741_v10  ;;  %1400 = vst.msk [vmem:[%s5054_s29 + $0xd0] sm:$0xf] %vm1347_vm0, %v3740_v3 }
 0x344   : > { %v3843_v6 = vpack.c.bf16 %v4184_v7, %v4184_v7  ;;  %v3842_v61 = vpack.c.bf16 %v4183_v24, %v4183_v24  ;;  %v3773_v46 = vpack.c.bf16 %v4169_v5, %v4169_v5  ;;  %v3772_v8 = vpack.c.bf16 %v4168_v39, %v4168_v39 }
 0x345   : > { %v4187_v9 = vpop.permute.xlu1 %4186  ;;  %v4172_v16 = vpop.permute.xlu0 %4171 }
 0x346   : > { %2335 = vst.msk [vmem:[%s5075_s9 + $0x6c] sm:$0xf] %vm1347_vm0, %v3843_v6  ;;  %2334 = vst.msk [vmem:[%s5075_s9 + $0x68] sm:$0xf] %vm1347_vm0, %v3842_v61  ;;  %v4189_v17 = vunpack.i.h.bf16 %v4187_v9  ;;  %v4188_v18 = vunpack.i.l.bf16 %v4187_v9  ;;  %v4174_v19 = vunpack.i.h.bf16 %v4172_v16  ;;  %v4173_v20 = vunpack.i.l.bf16 %v4172_v16 }
 0x347   : > { %1849 = vst.msk [vmem:[%s5060_s30 + $0x54] sm:$0xf] %vm1347_vm0, %v3773_v46  ;;  %1848 = vst.msk [vmem:[%s5060_s30 + $0x50] sm:$0xf] %vm1347_vm0, %v3772_v8 }
 0x348   : > { %v3859_v21 = vpack.c.bf16 %v4189_v17, %v4189_v17  ;;  %v3858_v62 = vpack.c.bf16 %v4188_v18, %v4188_v18  ;;  %v3789_v23 = vpack.c.bf16 %v4174_v19, %v4174_v19  ;;  %v3788_v26 = vpack.c.bf16 %v4173_v20, %v4173_v20 }
 0x349   : > { %v4192_v27 = vpop.permute.xlu1 %4191  ;;  %v4177_v56 = vpop.permute.xlu0 %4176 }
 0x34a   : > { %2351 = vst.msk [vmem:[%s5075_s9 + $0xac] sm:$0xf] %vm1347_vm0, %v3859_v21  ;;  %2350 = vst.msk [vmem:[%s5075_s9 + $0xa8] sm:$0xf] %vm1347_vm0, %v3858_v62  ;;  %v4194_v28 = vunpack.i.h.bf16 %v4192_v27  ;;  %v4193_v30 = vunpack.i.l.bf16 %v4192_v27  ;;  %v4179_v31 = vunpack.i.h.bf16 %v4177_v56  ;;  %v4178_v34 = vunpack.i.l.bf16 %v4177_v56 }
 0x34b   : > { %1865 = vst.msk [vmem:[%s5060_s30 + $0x94] sm:$0xf] %vm1347_vm0, %v3789_v23  ;;  %1864 = vst.msk [vmem:[%s5060_s30 + $0x90] sm:$0xf] %vm1347_vm0, %v3788_v26 }
 0x34c   : > { %v3875_v14 = vpack.c.bf16 %v4194_v28, %v4194_v28  ;;  %v3874_v54 = vpack.c.bf16 %v4193_v30, %v4193_v30  ;;  %v3805_v49 = vpack.c.bf16 %v4179_v31, %v4179_v31  ;;  %v3804_v15 = vpack.c.bf16 %v4178_v34, %v4178_v34 }
 0x34d   : > { %v4212_v35 = vpop.permute.xlu1 %4211  ;;  %v4197_v36 = vpop.permute.xlu0 %4196 }
 0x34e   : > { %2367 = vst.msk [vmem:[%s5075_s9 + $0xec] sm:$0xf] %vm1347_vm0, %v3875_v14  ;;  %2366 = vst.msk [vmem:[%s5075_s9 + $0xe8] sm:$0xf] %vm1347_vm0, %v3874_v54  ;;  %v4214_v38 = vunpack.i.h.bf16 %v4212_v35  ;;  %v4213_v40 = vunpack.i.l.bf16 %v4212_v35  ;;  %v4199_v42 = vunpack.i.h.bf16 %v4197_v36  ;;  %v4198_v43 = vunpack.i.l.bf16 %v4197_v36 }
 0x34f   : > { %1881 = vst.msk [vmem:[%s5060_s30 + $0xd4] sm:$0xf] %vm1347_vm0, %v3805_v49  ;;  %1880 = vst.msk [vmem:[%s5060_s30 + $0xd0] sm:$0xf] %vm1347_vm0, %v3804_v15 }
 0x350   : > { %v3711_v44 = vpack.c.bf16 %v4214_v38, %v4214_v38  ;;  %v3710_v32 = vpack.c.bf16 %v4213_v40, %v4213_v40  ;;  %v3841_v2 = vpack.c.bf16 %v4199_v42, %v4199_v42  ;;  %v3840_v45 = vpack.c.bf16 %v4198_v43, %v4198_v43 }
 0x351   : > { %v4217_v1 = vpop.permute.xlu1 %4216  ;;  %v4202_v48 = vpop.permute.xlu0 %4201 }
 0x352   : > { %1371 = vst.msk [vmem:[%s5054_s29 + $0x5c] sm:$0xf] %vm1347_vm0, %v3711_v44  ;;  %1370 = vst.msk [vmem:[%s5054_s29 + $0x58] sm:$0xf] %vm1347_vm0, %v3710_v32  ;;  %v4219_v51 = vunpack.i.h.bf16 %v4217_v1  ;;  %v4218_v29 = vunpack.i.l.bf16 %v4217_v1  ;;  %v4204_v25 = vunpack.i.h.bf16 %v4202_v48  ;;  %v4203_v52 = vunpack.i.l.bf16 %v4202_v48 }
 0x353   : > { %2333 = vst.msk [vmem:[%s5075_s9 + $0x64] sm:$0xf] %vm1347_vm0, %v3841_v2  ;;  %2332 = vst.msk [vmem:[%s5075_s9 + $0x60] sm:$0xf] %vm1347_vm0, %v3840_v45 }
 0x354   : > { %v3727_v53 = vpack.c.bf16 %v4219_v51, %v4219_v51  ;;  %v3726_v57 = vpack.c.bf16 %v4218_v29, %v4218_v29  ;;  %v3857_v58 = vpack.c.bf16 %v4204_v25, %v4204_v25  ;;  %v3856_v22 = vpack.c.bf16 %v4203_v52, %v4203_v52 }
 0x355   : > { %v4222_v59 = vpop.permute.xlu1 %4221  ;;  %v4207_v33 = vpop.permute.xlu0 %4206 }
 0x356   : > { %1387 = vst.msk [vmem:[%s5054_s29 + $0x9c] sm:$0xf] %vm1347_vm0, %v3727_v53  ;;  %1386 = vst.msk [vmem:[%s5054_s29 + $0x98] sm:$0xf] %vm1347_vm0, %v3726_v57  ;;  %v4224_v11 = vunpack.i.h.bf16 %v4222_v59  ;;  %v4223_v60 = vunpack.i.l.bf16 %v4222_v59  ;;  %v4209_v12 = vunpack.i.h.bf16 %v4207_v33  ;;  %v4208_v0 = vunpack.i.l.bf16 %v4207_v33 }
 0x357   : > { %2349 = vst.msk [vmem:[%s5075_s9 + $0xa4] sm:$0xf] %vm1347_vm0, %v3857_v58  ;;  %2348 = vst.msk [vmem:[%s5075_s9 + $0xa0] sm:$0xf] %vm1347_vm0, %v3856_v22 }
 0x358   : > { %v3743_v4 = vpack.c.bf16 %v4224_v11, %v4224_v11  ;;  %v3742_v41 = vpack.c.bf16 %v4223_v60, %v4223_v60  ;;  %v3873_v47 = vpack.c.bf16 %v4209_v12, %v4209_v12  ;;  %v3872_v55 = vpack.c.bf16 %v4208_v0, %v4208_v0 }
 0x359   : > { %v4227_v37 = vpop.permute.xlu1 %4226  ;;  %v4252_v50 = vpop.permute.xlu0 %4251 }
 0x35a   : > { %1403 = vst.msk [vmem:[%s5054_s29 + $0xdc] sm:$0xf] %vm1347_vm0, %v3743_v4  ;;  %1402 = vst.msk [vmem:[%s5054_s29 + $0xd8] sm:$0xf] %vm1347_vm0, %v3742_v41  ;;  %v4229_v10 = vunpack.i.h.bf16 %v4227_v37  ;;  %v4228_v3 = vunpack.i.l.bf16 %v4227_v37  ;;  %v4254_v13 = vunpack.i.h.bf16 %v4252_v50  ;;  %v4253_v63 = vunpack.i.l.bf16 %v4252_v50 }
 0x35b   : > { %2365 = vst.msk [vmem:[%s5075_s9 + $0xe4] sm:$0xf] %vm1347_vm0, %v3873_v47  ;;  %2364 = vst.msk [vmem:[%s5075_s9 + $0xe0] sm:$0xf] %vm1347_vm0, %v3872_v55 }
 0x35c   : > { %v3775_v7 = vpack.c.bf16 %v4229_v10, %v4229_v10  ;;  %v3774_v24 = vpack.c.bf16 %v4228_v3, %v4228_v3  ;;  %v3845_v5 = vpack.c.bf16 %v4254_v13, %v4254_v13  ;;  %v3844_v39 = vpack.c.bf16 %v4253_v63, %v4253_v63 }
 0x35d   : > { %v4232_v6 = vpop.permute.xlu1 %4231  ;;  %v4257_v61 = vpop.permute.xlu0 %4256 }
 0x35e   : > { %1851 = vst.msk [vmem:[%s5060_s30 + $0x5c] sm:$0xf] %vm1347_vm0, %v3775_v7  ;;  %1850 = vst.msk [vmem:[%s5060_s30 + $0x58] sm:$0xf] %vm1347_vm0, %v3774_v24  ;;  %v4234_v46 = vunpack.i.h.bf16 %v4232_v6  ;;  %v4233_v8 = vunpack.i.l.bf16 %v4232_v6  ;;  %v4259_v9 = vunpack.i.h.bf16 %v4257_v61  ;;  %v4258_v16 = vunpack.i.l.bf16 %v4257_v61 }
 0x35f   : > { %2337 = vst.msk [vmem:[%s5075_s9 + $0x74] sm:$0xf] %vm1347_vm0, %v3845_v5  ;;  %2336 = vst.msk [vmem:[%s5075_s9 + $0x70] sm:$0xf] %vm1347_vm0, %v3844_v39 }
 0x360   : > { %v3791_v17 = vpack.c.bf16 %v4234_v46, %v4234_v46  ;;  %v3790_v18 = vpack.c.bf16 %v4233_v8, %v4233_v8  ;;  %v3861_v19 = vpack.c.bf16 %v4259_v9, %v4259_v9  ;;  %v3860_v20 = vpack.c.bf16 %v4258_v16, %v4258_v16 }
 0x361   : > { %v4237_v21 = vpop.permute.xlu1 %4236  ;;  %v4262_v62 = vpop.permute.xlu0 %4261 }
 0x362   : > { %1867 = vst.msk [vmem:[%s5060_s30 + $0x9c] sm:$0xf] %vm1347_vm0, %v3791_v17  ;;  %1866 = vst.msk [vmem:[%s5060_s30 + $0x98] sm:$0xf] %vm1347_vm0, %v3790_v18  ;;  %v4239_v23 = vunpack.i.h.bf16 %v4237_v21  ;;  %v4238_v26 = vunpack.i.l.bf16 %v4237_v21  ;;  %v4264_v27 = vunpack.i.h.bf16 %v4262_v62  ;;  %v4263_v56 = vunpack.i.l.bf16 %v4262_v62 }
 0x363   : > { %2353 = vst.msk [vmem:[%s5075_s9 + $0xb4] sm:$0xf] %vm1347_vm0, %v3861_v19  ;;  %2352 = vst.msk [vmem:[%s5075_s9 + $0xb0] sm:$0xf] %vm1347_vm0, %v3860_v20 }
 0x364   : > { %v3807_v28 = vpack.c.bf16 %v4239_v23, %v4239_v23  ;;  %v3806_v30 = vpack.c.bf16 %v4238_v26, %v4238_v26  ;;  %v3713_v31 = vpack.c.bf16 %v4264_v27, %v4264_v27  ;;  %v3712_v34 = vpack.c.bf16 %v4263_v56, %v4263_v56 }
 0x365   : > { %v4242_v14 = vpop.permute.xlu1 %4241  ;;  %v4267_v54 = vpop.permute.xlu0 %4266 }
 0x366   : > { %1883 = vst.msk [vmem:[%s5060_s30 + $0xdc] sm:$0xf] %vm1347_vm0, %v3807_v28  ;;  %1882 = vst.msk [vmem:[%s5060_s30 + $0xd8] sm:$0xf] %vm1347_vm0, %v3806_v30  ;;  %v4244_v49 = vunpack.i.h.bf16 %v4242_v14  ;;  %v4243_v15 = vunpack.i.l.bf16 %v4242_v14  ;;  %v4269_v35 = vunpack.i.h.bf16 %v4267_v54  ;;  %v4268_v36 = vunpack.i.l.bf16 %v4267_v54 }
 0x367   : > { %1373 = vst.msk [vmem:[%s5054_s29 + $0x64] sm:$0xf] %vm1347_vm0, %v3713_v31  ;;  %1372 = vst.msk [vmem:[%s5054_s29 + $0x60] sm:$0xf] %vm1347_vm0, %v3712_v34 }
 0x368   : > { %v3847_v38 = vpack.c.bf16 %v4244_v49, %v4244_v49  ;;  %v3846_v40 = vpack.c.bf16 %v4243_v15, %v4243_v15  ;;  %v3729_v42 = vpack.c.bf16 %v4269_v35, %v4269_v35  ;;  %v3728_v43 = vpack.c.bf16 %v4268_v36, %v4268_v36 }
 0x369   : > { %v4247_v44 = vpop.permute.xlu1 %4246  ;;  %v4272_v32 = vpop.permute.xlu0 %4271 }
 0x36a   : > { %2339 = vst.msk [vmem:[%s5075_s9 + $0x7c] sm:$0xf] %vm1347_vm0, %v3847_v38  ;;  %2338 = vst.msk [vmem:[%s5075_s9 + $0x78] sm:$0xf] %vm1347_vm0, %v3846_v40  ;;  %v4249_v2 = vunpack.i.h.bf16 %v4247_v44  ;;  %v4248_v45 = vunpack.i.l.bf16 %v4247_v44  ;;  %v4274_v1 = vunpack.i.h.bf16 %v4272_v32  ;;  %v4273_v48 = vunpack.i.l.bf16 %v4272_v32 }
 0x36b   : > { %1389 = vst.msk [vmem:[%s5054_s29 + $0xa4] sm:$0xf] %vm1347_vm0, %v3729_v42  ;;  %1388 = vst.msk [vmem:[%s5054_s29 + $0xa0] sm:$0xf] %vm1347_vm0, %v3728_v43 }
 0x36c   : > { %v3863_v51 = vpack.c.bf16 %v4249_v2, %v4249_v2  ;;  %v3862_v29 = vpack.c.bf16 %v4248_v45, %v4248_v45  ;;  %v3745_v25 = vpack.c.bf16 %v4274_v1, %v4274_v1  ;;  %v3744_v52 = vpack.c.bf16 %v4273_v48, %v4273_v48 }
 0x36d   : > { %v4292_v53 = vpop.permute.xlu1 %4291  ;;  %v4277_v57 = vpop.permute.xlu0 %4276 }
 0x36e   : > { %2355 = vst.msk [vmem:[%s5075_s9 + $0xbc] sm:$0xf] %vm1347_vm0, %v3863_v51  ;;  %2354 = vst.msk [vmem:[%s5075_s9 + $0xb8] sm:$0xf] %vm1347_vm0, %v3862_v29  ;;  %v4294_v58 = vunpack.i.h.bf16 %v4292_v53  ;;  %v4293_v22 = vunpack.i.l.bf16 %v4292_v53  ;;  %v4279_v59 = vunpack.i.h.bf16 %v4277_v57  ;;  %v4278_v33 = vunpack.i.l.bf16 %v4277_v57 }
 0x36f   : > { %1405 = vst.msk [vmem:[%s5054_s29 + $0xe4] sm:$0xf] %vm1347_vm0, %v3745_v25  ;;  %1404 = vst.msk [vmem:[%s5054_s29 + $0xe0] sm:$0xf] %vm1347_vm0, %v3744_v52 }
 0x370   : > { %v3715_v11 = vpack.c.bf16 %v4294_v58, %v4294_v58  ;;  %v3714_v60 = vpack.c.bf16 %v4293_v22, %v4293_v22  ;;  %v3777_v12 = vpack.c.bf16 %v4279_v59, %v4279_v59  ;;  %v3776_v0 = vpack.c.bf16 %v4278_v33, %v4278_v33 }
 0x371   : > { %v4297_v4 = vpop.permute.xlu1 %4296  ;;  %v4282_v41 = vpop.permute.xlu0 %4281 }
 0x372   : > { %1375 = vst.msk [vmem:[%s5054_s29 + $0x6c] sm:$0xf] %vm1347_vm0, %v3715_v11  ;;  %1374 = vst.msk [vmem:[%s5054_s29 + $0x68] sm:$0xf] %vm1347_vm0, %v3714_v60  ;;  %v4299_v47 = vunpack.i.h.bf16 %v4297_v4  ;;  %v4298_v55 = vunpack.i.l.bf16 %v4297_v4  ;;  %v4284_v37 = vunpack.i.h.bf16 %v4282_v41  ;;  %v4283_v50 = vunpack.i.l.bf16 %v4282_v41 }
 0x373   : > { %1853 = vst.msk [vmem:[%s5060_s30 + $0x64] sm:$0xf] %vm1347_vm0, %v3777_v12  ;;  %1852 = vst.msk [vmem:[%s5060_s30 + $0x60] sm:$0xf] %vm1347_vm0, %v3776_v0 }
 0x374   : > { %v3731_v10 = vpack.c.bf16 %v4299_v47, %v4299_v47  ;;  %v3730_v3 = vpack.c.bf16 %v4298_v55, %v4298_v55  ;;  %v3793_v13 = vpack.c.bf16 %v4284_v37, %v4284_v37  ;;  %v3792_v63 = vpack.c.bf16 %v4283_v50, %v4283_v50 }
 0x375   : > { %v4302_v7 = vpop.permute.xlu1 %4301  ;;  %v4287_v24 = vpop.permute.xlu0 %4286 }
 0x376   : > { %1391 = vst.msk [vmem:[%s5054_s29 + $0xac] sm:$0xf] %vm1347_vm0, %v3731_v10  ;;  %1390 = vst.msk [vmem:[%s5054_s29 + $0xa8] sm:$0xf] %vm1347_vm0, %v3730_v3  ;;  %v4304_v5 = vunpack.i.h.bf16 %v4302_v7  ;;  %v4303_v39 = vunpack.i.l.bf16 %v4302_v7  ;;  %v4289_v6 = vunpack.i.h.bf16 %v4287_v24  ;;  %v4288_v61 = vunpack.i.l.bf16 %v4287_v24 }
 0x377   : > { %1869 = vst.msk [vmem:[%s5060_s30 + $0xa4] sm:$0xf] %vm1347_vm0, %v3793_v13  ;;  %1868 = vst.msk [vmem:[%s5060_s30 + $0xa0] sm:$0xf] %vm1347_vm0, %v3792_v63 }
 0x378   : > { %v3747_v46 = vpack.c.bf16 %v4304_v5, %v4304_v5  ;;  %v3746_v8 = vpack.c.bf16 %v4303_v39, %v4303_v39  ;;  %v3809_v9 = vpack.c.bf16 %v4289_v6, %v4289_v6  ;;  %v3808_v16 = vpack.c.bf16 %v4288_v61, %v4288_v61 }
 0x379   : > { %v4307_v17 = vpop.permute.xlu1 %4306  ;;  %v4322_v18 = vpop.permute.xlu0 %4321 }
 0x37a   : > { %1407 = vst.msk [vmem:[%s5054_s29 + $0xec] sm:$0xf] %vm1347_vm0, %v3747_v46  ;;  %1406 = vst.msk [vmem:[%s5054_s29 + $0xe8] sm:$0xf] %vm1347_vm0, %v3746_v8  ;;  %v4309_v19 = vunpack.i.h.bf16 %v4307_v17  ;;  %v4308_v20 = vunpack.i.l.bf16 %v4307_v17  ;;  %v4324_v21 = vunpack.i.h.bf16 %v4322_v18  ;;  %v4323_v62 = vunpack.i.l.bf16 %v4322_v18 }
 0x37b   : > { %1885 = vst.msk [vmem:[%s5060_s30 + $0xe4] sm:$0xf] %vm1347_vm0, %v3809_v9  ;;  %1884 = vst.msk [vmem:[%s5060_s30 + $0xe0] sm:$0xf] %vm1347_vm0, %v3808_v16 }
 0x37c   : > { %v3779_v23 = vpack.c.bf16 %v4309_v19, %v4309_v19  ;;  %v3778_v26 = vpack.c.bf16 %v4308_v20, %v4308_v20  ;;  %v3717_v27 = vpack.c.bf16 %v4324_v21, %v4324_v21  ;;  %v3716_v56 = vpack.c.bf16 %v4323_v62, %v4323_v62 }
 0x37d   : > { %v4312_v28 = vpop.permute.xlu1 %4311  ;;  %v4327_v30 = vpop.permute.xlu0 %4326 }
 0x37e   : > { %1855 = vst.msk [vmem:[%s5060_s30 + $0x6c] sm:$0xf] %vm1347_vm0, %v3779_v23  ;;  %1854 = vst.msk [vmem:[%s5060_s30 + $0x68] sm:$0xf] %vm1347_vm0, %v3778_v26  ;;  %v4314_v31 = vunpack.i.h.bf16 %v4312_v28  ;;  %v4313_v34 = vunpack.i.l.bf16 %v4312_v28  ;;  %v4329_v14 = vunpack.i.h.bf16 %v4327_v30  ;;  %v4328_v54 = vunpack.i.l.bf16 %v4327_v30 }
 0x37f   : > { %1377 = vst.msk [vmem:[%s5054_s29 + $0x74] sm:$0xf] %vm1347_vm0, %v3717_v27  ;;  %1376 = vst.msk [vmem:[%s5054_s29 + $0x70] sm:$0xf] %vm1347_vm0, %v3716_v56 }
 0x380   : > { %v3795_v49 = vpack.c.bf16 %v4314_v31, %v4314_v31  ;;  %v3794_v15 = vpack.c.bf16 %v4313_v34, %v4313_v34  ;;  %v3733_v35 = vpack.c.bf16 %v4329_v14, %v4329_v14  ;;  %v3732_v36 = vpack.c.bf16 %v4328_v54, %v4328_v54 }
 0x381   : > { %v4317_v38 = vpop.permute.xlu1 %4316  ;;  %v4332_v40 = vpop.permute.xlu0 %4331 }
 0x382   : > { %1871 = vst.msk [vmem:[%s5060_s30 + $0xac] sm:$0xf] %vm1347_vm0, %v3795_v49  ;;  %1870 = vst.msk [vmem:[%s5060_s30 + $0xa8] sm:$0xf] %vm1347_vm0, %v3794_v15  ;;  %v4319_v42 = vunpack.i.h.bf16 %v4317_v38  ;;  %v4318_v43 = vunpack.i.l.bf16 %v4317_v38  ;;  %v4334_v44 = vunpack.i.h.bf16 %v4332_v40  ;;  %v4333_v32 = vunpack.i.l.bf16 %v4332_v40  ;;  %v2407_v40 = vld [vmem:[%s5054_s29] sm:$0xff] (%p4785_p6)  }
 0x383   : > { %1393 = vst.msk [vmem:[%s5054_s29 + $0xb4] sm:$0xf] %vm1347_vm0, %v3733_v35  ;;  %1392 = vst.msk [vmem:[%s5054_s29 + $0xb0] sm:$0xf] %vm1347_vm0, %v3732_v36 }
 0x384   : > { %v3811_v2 = vpack.c.bf16 %v4319_v42, %v4319_v42  ;;  %v3810_v45 = vpack.c.bf16 %v4318_v43, %v4318_v43  ;;  %v3749_v1 = vpack.c.bf16 %v4334_v44, %v4334_v44  ;;  %v3748_v48 = vpack.c.bf16 %v4333_v32, %v4333_v32  ;;  %v2411_v42 = vld [vmem:[%s5054_s29 + $0x8] sm:$0xff] (%p4785_p6)   ;;  %v2415_v43 = vld [vmem:[%s5054_s29 + $0x10] sm:$0xff] (%p4785_p6)   ;;  %v2419_v44 = vld [vmem:[%s5054_s29 + $0x18] sm:$0xff] (%p4785_p6)   ;;  %2408 = vst [vmem:[%s5688_s28] sm:$0xff] (%p4785_p6), %v2407_v40  }
 0x385   : > { %v4352_v51 = vpop.permute.xlu1 %4351  ;;  %v4337_v29 = vpop.permute.xlu0 %4336  ;;  %v2423_v32 = vld [vmem:[%s5054_s29 + $0x20] sm:$0xff] (%p4785_p6)   ;;  %2412 = vst [vmem:[%s5688_s28 + $0x8] sm:$0xff] (%p4785_p6), %v2411_v42   ;;  %2416 = vst [vmem:[%s5688_s28 + $0x10] sm:$0xff] (%p4785_p6), %v2415_v43  }
 0x386   : > { %1887 = vst.msk [vmem:[%s5060_s30 + $0xec] sm:$0xf] %vm1347_vm0, %v3811_v2  ;;  %1886 = vst.msk [vmem:[%s5060_s30 + $0xe8] sm:$0xf] %vm1347_vm0, %v3810_v45  ;;  %v4354_v25 = vunpack.i.h.bf16 %v4352_v51  ;;  %v4353_v52 = vunpack.i.l.bf16 %v4352_v51  ;;  %v4339_v53 = vunpack.i.h.bf16 %v4337_v29  ;;  %v4338_v57 = vunpack.i.l.bf16 %v4337_v29  ;;  %v2427_v2 = vld [vmem:[%s5054_s29 + $0x28] sm:$0xff] (%p4785_p6)   ;;  %v2431_v45 = vld [vmem:[%s5054_s29 + $0x30] sm:$0xff] (%p4785_p6)  }
 0x387   : > { %1409 = vst.msk [vmem:[%s5054_s29 + $0xf4] sm:$0xf] %vm1347_vm0, %v3749_v1  ;;  %1408 = vst.msk [vmem:[%s5054_s29 + $0xf0] sm:$0xf] %vm1347_vm0, %v3748_v48  ;;  %v2435_v1 = vld [vmem:[%s5054_s29 + $0x38] sm:$0xff] (%p4785_p6)   ;;  %v2439_v48 = vld [vmem:[%s5054_s29 + $0x40] sm:$0xff] (%p4785_p6)  }
 0x388   : > { %v3719_v58 = vpack.c.bf16 %v4354_v25, %v4354_v25  ;;  %v3718_v22 = vpack.c.bf16 %v4353_v52, %v4353_v52  ;;  %v3781_v59 = vpack.c.bf16 %v4339_v53, %v4339_v53  ;;  %v3780_v33 = vpack.c.bf16 %v4338_v57, %v4338_v57  ;;  %v2443_v51 = vld [vmem:[%s5054_s29 + $0x48] sm:$0xff] (%p4785_p6)   ;;  %v2447_v29 = vld [vmem:[%s5054_s29 + $0x50] sm:$0xff] (%p4785_p6)   ;;  %v2451_v25 = vld [vmem:[%s5054_s29 + $0x58] sm:$0xff] (%p4785_p6)   ;;  %2420 = vst [vmem:[%s5688_s28 + $0x18] sm:$0xff] (%p4785_p6), %v2419_v44  }
 0x389   : > { %v4357_v11 = vpop.permute.xlu1 %4356  ;;  %v4342_v60 = vpop.permute.xlu0 %4341  ;;  %2424 = vst [vmem:[%s5688_s28 + $0x20] sm:$0xff] (%p4785_p6), %v2423_v32   ;;  %2428 = vst [vmem:[%s5688_s28 + $0x28] sm:$0xff] (%p4785_p6), %v2427_v2   ;;  %v2455_v52 = vld [vmem:[%s5054_s29 + $0x60] sm:$0xff] (%p4785_p6)   ;;  %v2459_v53 = vld [vmem:[%s5054_s29 + $0x68] sm:$0xff] (%p4785_p6)  }
 0x38a   : > { %1379 = vst.msk [vmem:[%s5054_s29 + $0x7c] sm:$0xf] %vm1347_vm0, %v3719_v58  ;;  %1378 = vst.msk [vmem:[%s5054_s29 + $0x78] sm:$0xf] %vm1347_vm0, %v3718_v22  ;;  %v4359_v12 = vunpack.i.h.bf16 %v4357_v11  ;;  %v4358_v0 = vunpack.i.l.bf16 %v4357_v11  ;;  %v4344_v4 = vunpack.i.h.bf16 %v4342_v60  ;;  %v4343_v41 = vunpack.i.l.bf16 %v4342_v60  ;;  %v2463_v57 = vld [vmem:[%s5054_s29 + $0x70] sm:$0xff] (%p4785_p6)   ;;  %v2471_v22 = vld [vmem:[%s5054_s29 + $0x80] sm:$0xff] (%p4785_p6)  }
 0x38b   : > { %1857 = vst.msk [vmem:[%s5060_s30 + $0x74] sm:$0xf] %vm1347_vm0, %v3781_v59  ;;  %1856 = vst.msk [vmem:[%s5060_s30 + $0x70] sm:$0xf] %vm1347_vm0, %v3780_v33  ;;  %v2475_v59 = vld [vmem:[%s5054_s29 + $0x88] sm:$0xff] (%p4785_p6)   ;;  %v2479_v33 = vld [vmem:[%s5054_s29 + $0x90] sm:$0xff] (%p4785_p6)  }
 0x38c   : > { %v3735_v47 = vpack.c.bf16 %v4359_v12, %v4359_v12  ;;  %v3734_v55 = vpack.c.bf16 %v4358_v0, %v4358_v0  ;;  %v3797_v37 = vpack.c.bf16 %v4344_v4, %v4344_v4  ;;  %v3796_v50 = vpack.c.bf16 %v4343_v41, %v4343_v41  ;;  %2432 = vst [vmem:[%s5688_s28 + $0x30] sm:$0xff] (%p4785_p6), %v2431_v45   ;;  %v2483_v11 = vld [vmem:[%s5054_s29 + $0x98] sm:$0xff] (%p4785_p6)   ;;  %v2487_v60 = vld [vmem:[%s5054_s29 + $0xa0] sm:$0xff] (%p4785_p6)   ;;  %v2491_v12 = vld [vmem:[%s5054_s29 + $0xa8] sm:$0xff] (%p4785_p6)  }
 0x38d   : > { %v4362_v10 = vpop.permute.xlu1 %4361  ;;  %v4347_v3 = vpop.permute.xlu0 %4346  ;;  %2436 = vst [vmem:[%s5688_s28 + $0x38] sm:$0xff] (%p4785_p6), %v2435_v1   ;;  %2440 = vst [vmem:[%s5688_s28 + $0x80] sm:$0xff] (%p4785_p6), %v2439_v48   ;;  %v2495_v0 = vld [vmem:[%s5054_s29 + $0xb0] sm:$0xff] (%p4785_p6)   ;;  %v2503_v41 = vld [vmem:[%s5054_s29 + $0xc0] sm:$0xff] (%p4785_p6)  }
 0x38e   : > { %1395 = vst.msk [vmem:[%s5054_s29 + $0xbc] sm:$0xf] %vm1347_vm0, %v3735_v47  ;;  %1394 = vst.msk [vmem:[%s5054_s29 + $0xb8] sm:$0xf] %vm1347_vm0, %v3734_v55  ;;  %v4364_v13 = vunpack.i.h.bf16 %v4362_v10  ;;  %v4363_v63 = vunpack.i.l.bf16 %v4362_v10  ;;  %v4349_v7 = vunpack.i.h.bf16 %v4347_v3  ;;  %v4348_v24 = vunpack.i.l.bf16 %v4347_v3  ;;  %v2507_v47 = vld [vmem:[%s5054_s29 + $0xc8] sm:$0xff] (%p4785_p6)   ;;  %v2511_v55 = vld [vmem:[%s5054_s29 + $0xd0] sm:$0xff] (%p4785_p6)  }
 0x38f   : > { %1873 = vst.msk [vmem:[%s5060_s30 + $0xb4] sm:$0xf] %vm1347_vm0, %v3797_v37  ;;  %1872 = vst.msk [vmem:[%s5060_s30 + $0xb0] sm:$0xf] %vm1347_vm0, %v3796_v50  ;;  %v2515_v37 = vld [vmem:[%s5054_s29 + $0xd8] sm:$0xff] (%p4785_p6)   ;;  %v2519_v50 = vld [vmem:[%s5054_s29 + $0xe0] sm:$0xff] (%p4785_p6)  }
 0x390   : > { %v3751_v5 = vpack.c.bf16 %v4364_v13, %v4364_v13  ;;  %v3750_v39 = vpack.c.bf16 %v4363_v63, %v4363_v63  ;;  %v3813_v6 = vpack.c.bf16 %v4349_v7, %v4349_v7  ;;  %v3812_v61 = vpack.c.bf16 %v4348_v24, %v4348_v24  ;;  %2444 = vst [vmem:[%s5688_s28 + $0x88] sm:$0xff] (%p4785_p6), %v2443_v51   ;;  %v2523_v10 = vld [vmem:[%s5054_s29 + $0xe8] sm:$0xff] (%p4785_p6)   ;;  %v2527_v3 = vld [vmem:[%s5054_s29 + $0xf0] sm:$0xff] (%p4785_p6)  }
 0x391   : > { %v4367_v46 = vpop.permute.xlu1 %4366  ;;  %v4382_v8 = vpop.permute.xlu0 %4381  ;;  %2448 = vst [vmem:[%s5688_s28 + $0x90] sm:$0xff] (%p4785_p6), %v2447_v29   ;;  %2452 = vst [vmem:[%s5688_s28 + $0x98] sm:$0xff] (%p4785_p6), %v2451_v25   ;;  %v2467_v58 = vld [vmem:[%s5054_s29 + $0x78] sm:$0xff] (%p4785_p6)  }
 0x392   : > { %1411 = vst.msk [vmem:[%s5054_s29 + $0xfc] sm:$0xf] %vm1347_vm0, %v3751_v5  ;;  %1410 = vst.msk [vmem:[%s5054_s29 + $0xf8] sm:$0xf] %vm1347_vm0, %v3750_v39  ;;  %v4369_v9 = vunpack.i.h.bf16 %v4367_v46  ;;  %v4368_v16 = vunpack.i.l.bf16 %v4367_v46  ;;  %v4384_v17 = vunpack.i.h.bf16 %v4382_v8  ;;  %v4383_v18 = vunpack.i.l.bf16 %v4382_v8 }
 0x393   : > { %1889 = vst.msk [vmem:[%s5060_s30 + $0xf4] sm:$0xf] %vm1347_vm0, %v3813_v6  ;;  %1888 = vst.msk [vmem:[%s5060_s30 + $0xf0] sm:$0xf] %vm1347_vm0, %v3812_v61 }
 0x394   : > { %v3783_v19 = vpack.c.bf16 %v4369_v9, %v4369_v9  ;;  %v3782_v20 = vpack.c.bf16 %v4368_v16, %v4368_v16  ;;  %v3877_v21 = vpack.c.bf16 %v4384_v17, %v4384_v17  ;;  %v3876_v62 = vpack.c.bf16 %v4383_v18, %v4383_v18  ;;  %2456 = vst [vmem:[%s5688_s28 + $0xa0] sm:$0xff] (%p4785_p6), %v2455_v52  }
 0x395   : > { %v4372_v23 = vpop.permute.xlu1 %4371  ;;  %2460 = vst [vmem:[%s5688_s28 + $0xa8] sm:$0xff] (%p4785_p6), %v2459_v53   ;;  %2464 = vst [vmem:[%s5688_s28 + $0xb0] sm:$0xff] (%p4785_p6), %v2463_v57   ;;  %v2499_v4 = vld [vmem:[%s5054_s29 + $0xb8] sm:$0xff] (%p4785_p6)  }
 0x396   : > { %1859 = vst.msk [vmem:[%s5060_s30 + $0x7c] sm:$0xf] %vm1347_vm0, %v3783_v19  ;;  %1858 = vst.msk [vmem:[%s5060_s30 + $0x78] sm:$0xf] %vm1347_vm0, %v3782_v20  ;;  %v4374_v26 = vunpack.i.h.bf16 %v4372_v23  ;;  %v4373_v27 = vunpack.i.l.bf16 %v4372_v23 }
 0x397   : > { %2369 = vst.msk [vmem:[%s5075_s9 + $0xf4] sm:$0xf] %vm1347_vm0, %v3877_v21  ;;  %2368 = vst.msk [vmem:[%s5075_s9 + $0xf0] sm:$0xf] %vm1347_vm0, %v3876_v62 }
 0x398   : > { %v3799_v56 = vpack.c.bf16 %v4374_v26, %v4374_v26  ;;  %v3798_v28 = vpack.c.bf16 %v4373_v27, %v4373_v27  ;;  %2468 = vst [vmem:[%s5688_s28 + $0xb8] sm:$0xff] (%p4785_p6), %v2467_v58   ;;  %2472 = vst [vmem:[%s5688_s28 + $0x100] sm:$0xff] (%p4785_p6), %v2471_v22  }
 0x399   : > { %v4377_v30 = vpop.permute.xlu1 %4376  ;;  %2476 = vst [vmem:[%s5688_s28 + $0x108] sm:$0xff] (%p4785_p6), %v2475_v59   ;;  %2480 = vst [vmem:[%s5688_s28 + $0x110] sm:$0xff] (%p4785_p6), %v2479_v33   ;;  %v2531_v13 = vld [vmem:[%s5054_s29 + $0xf8] sm:$0xff] (%p4785_p6)  }
 0x39a   : > { %1875 = vst.msk [vmem:[%s5060_s30 + $0xbc] sm:$0xf] %vm1347_vm0, %v3799_v56  ;;  %1874 = vst.msk [vmem:[%s5060_s30 + $0xb8] sm:$0xf] %vm1347_vm0, %v3798_v28  ;;  %v4379_v31 = vunpack.i.h.bf16 %v4377_v30  ;;  %v4378_v34 = vunpack.i.l.bf16 %v4377_v30 }
 0x39b   : > { %2484 = vst [vmem:[%s5688_s28 + $0x118] sm:$0xff] (%p4785_p6), %v2483_v11   ;;  %2488 = vst [vmem:[%s5688_s28 + $0x120] sm:$0xff] (%p4785_p6), %v2487_v60  }
 0x39c   : > { %v3815_v14 = vpack.c.bf16 %v4379_v31, %v4379_v31  ;;  %v3814_v54 = vpack.c.bf16 %v4378_v34, %v4378_v34  ;;  %2386 = sbr.rel (!%p4785_p6) target bundleno = 932 (0x3a4), region = 48  ;;  %2492 = vst [vmem:[%s5688_s28 + $0x128] sm:$0xff] (%p4785_p6), %v2491_v12   ;;  %2496 = vst [vmem:[%s5688_s28 + $0x130] sm:$0xff] (%p4785_p6), %v2495_v0  }
 0x39d   : > { %v4387_v49 = vpop.permute.xlu1 %4386  ;;  %2500 = vst [vmem:[%s5688_s28 + $0x138] sm:$0xff] (%p4785_p6), %v2499_v4   ;;  %2504 = vst [vmem:[%s5688_s28 + $0x180] sm:$0xff] (%p4785_p6), %v2503_v41  }
 0x39e   : > { %1891 = vst.msk [vmem:[%s5060_s30 + $0xfc] sm:$0xf] %vm1347_vm0, %v3815_v14  ;;  %1890 = vst.msk [vmem:[%s5060_s30 + $0xf8] sm:$0xf] %vm1347_vm0, %v3814_v54  ;;  %v4389_v15 = vunpack.i.h.bf16 %v4387_v49  ;;  %v4388_v35 = vunpack.i.l.bf16 %v4387_v49 }
 0x39f   : > { %2508 = vst [vmem:[%s5688_s28 + $0x188] sm:$0xff] (%p4785_p6), %v2507_v47   ;;  %2512 = vst [vmem:[%s5688_s28 + $0x190] sm:$0xff] (%p4785_p6), %v2511_v55  }
 0x3a0   : > { %v3879_v36 = vpack.c.bf16 %v4389_v15, %v4389_v15  ;;  %v3878_v38 = vpack.c.bf16 %v4388_v35, %v4388_v35  ;;  %2516 = vst [vmem:[%s5688_s28 + $0x198] sm:$0xff] (%p4785_p6), %v2515_v37   ;;  %2520 = vst [vmem:[%s5688_s28 + $0x1a0] sm:$0xff] (%p4785_p6), %v2519_v50  }
 0x3a1   : > { %2524 = vst [vmem:[%s5688_s28 + $0x1a8] sm:$0xff] (%p4785_p6), %v2523_v10   ;;  %2528 = vst [vmem:[%s5688_s28 + $0x1b0] sm:$0xff] (%p4785_p6), %v2527_v3  }
 0x3a2   : > { %2371 = vst.msk [vmem:[%s5075_s9 + $0xfc] sm:$0xf] %vm1347_vm0, %v3879_v36  ;;  %2370 = vst.msk [vmem:[%s5075_s9 + $0xf8] sm:$0xf] %vm1347_vm0, %v3878_v38 }
 0x3a3   : > { %2532 = vst [vmem:[%s5688_s28 + $0x1b8] sm:$0xff] %v2531_v13  }
 0x3a4 PF: > { %2685 = sbr.rel (!%p4785_p6) target bundleno = 953 (0x3b9), region = 89  ;;  %s3680_s6 = sshll.u32 (%p4785_p6), %s4594_s21, 4  ;;  %v2706_v63 = vld [vmem:[%s5060_s30] sm:$0xff] (%p4785_p6)   ;;  %v2710_v7 = vld [vmem:[%s5060_s30 + $0x8] sm:$0xff] (%p4785_p6)   ;;  %v2714_v24 = vld [vmem:[%s5060_s30 + $0x10] sm:$0xff] (%p4785_p6)  }
 0x3a5   : > { %s3681_s1 = sshll.u32 (%p4785_p6), %s4598_s22, 7  ;;  %v2718_v5 = vld [vmem:[%s5060_s30 + $0x18] sm:$0xff] (%p4785_p6)   ;;  %v2722_v39 = vld [vmem:[%s5060_s30 + $0x20] sm:$0xff] (%p4785_p6)   ;;  %v2726_v6 = vld [vmem:[%s5060_s30 + $0x28] sm:$0xff] (%p4785_p6)  }
 0x3a6   : > { %s2688_s10 = sadd.s32 (%p4785_p6), %s3681_s1, %s3680_s6  ;;  %v2730_v61 = vld [vmem:[%s5060_s30 + $0x30] sm:$0xff] (%p4785_p6)   ;;  %v2734_v46 = vld [vmem:[%s5060_s30 + $0x38] sm:$0xff] (%p4785_p6)   ;;  %v2738_v8 = vld [vmem:[%s5060_s30 + $0x40] sm:$0xff] (%p4785_p6)  }
 0x3a7   : > { %s3682_s23 = sshll.u32 (%p4785_p6), %s2688_s10, 2  ;;  %v2742_v9 = vld [vmem:[%s5060_s30 + $0x48] sm:$0xff] (%p4785_p6)   ;;  %v2746_v16 = vld [vmem:[%s5060_s30 + $0x50] sm:$0xff] (%p4785_p6)   ;;  %v2750_v17 = vld [vmem:[%s5060_s30 + $0x58] sm:$0xff] (%p4785_p6)  }
 0x3a8   : > { %s5761_s29 = scalar_lea.vmem (%p4785_p6), %s5919_s4, %s3682_s23  ;;  %v2754_v18 = vld [vmem:[%s5060_s30 + $0x60] sm:$0xff] (%p4785_p6)   ;;  %v2758_v19 = vld [vmem:[%s5060_s30 + $0x68] sm:$0xff] (%p4785_p6)   ;;  %v2762_v20 = vld [vmem:[%s5060_s30 + $0x70] sm:$0xff] (%p4785_p6)  }
 0x3a9   : > { %2707 = vst [vmem:[%s5761_s29] sm:$0xff] (%p4785_p6), %v2706_v63   ;;  %2711 = vst [vmem:[%s5761_s29 + $0x8] sm:$0xff] (%p4785_p6), %v2710_v7   ;;  %v2766_v21 = vld [vmem:[%s5060_s30 + $0x78] sm:$0xff] (%p4785_p6)   ;;  %v2770_v62 = vld [vmem:[%s5060_s30 + $0x80] sm:$0xff] (%p4785_p6)  }
 0x3aa   : > { %2715 = vst [vmem:[%s5761_s29 + $0x10] sm:$0xff] (%p4785_p6), %v2714_v24   ;;  %2719 = vst [vmem:[%s5761_s29 + $0x18] sm:$0xff] (%p4785_p6), %v2718_v5   ;;  %v2774_v23 = vld [vmem:[%s5060_s30 + $0x88] sm:$0xff] (%p4785_p6)   ;;  %v2778_v26 = vld [vmem:[%s5060_s30 + $0x90] sm:$0xff] (%p4785_p6)  }
 0x3ab   : > { %2723 = vst [vmem:[%s5761_s29 + $0x20] sm:$0xff] %v2722_v39   ;;  %2727 = vst [vmem:[%s5761_s29 + $0x28] sm:$0xff] %v2726_v6   ;;  %v2782_v27 = vld [vmem:[%s5060_s30 + $0x98] sm:$0xff]   ;;  %v2786_v56 = vld [vmem:[%s5060_s30 + $0xa0] sm:$0xff]  }
 0x3ac   : > { %2731 = vst [vmem:[%s5761_s29 + $0x30] sm:$0xff] %v2730_v61   ;;  %2735 = vst [vmem:[%s5761_s29 + $0x38] sm:$0xff] %v2734_v46   ;;  %v2790_v28 = vld [vmem:[%s5060_s30 + $0xa8] sm:$0xff]   ;;  %v2794_v30 = vld [vmem:[%s5060_s30 + $0xb0] sm:$0xff]  }
 0x3ad   : > { %2739 = vst [vmem:[%s5761_s29 + $0x80] sm:$0xff] %v2738_v8   ;;  %2743 = vst [vmem:[%s5761_s29 + $0x88] sm:$0xff] %v2742_v9   ;;  %v2798_v31 = vld [vmem:[%s5060_s30 + $0xb8] sm:$0xff]   ;;  %v2802_v34 = vld [vmem:[%s5060_s30 + $0xc0] sm:$0xff]  }
 0x3ae   : > { %2747 = vst [vmem:[%s5761_s29 + $0x90] sm:$0xff] %v2746_v16   ;;  %2751 = vst [vmem:[%s5761_s29 + $0x98] sm:$0xff] %v2750_v17   ;;  %v2806_v14 = vld [vmem:[%s5060_s30 + $0xc8] sm:$0xff]   ;;  %v2810_v54 = vld [vmem:[%s5060_s30 + $0xd0] sm:$0xff]  }
 0x3af   : > { %2755 = vst [vmem:[%s5761_s29 + $0xa0] sm:$0xff] %v2754_v18   ;;  %2759 = vst [vmem:[%s5761_s29 + $0xa8] sm:$0xff] %v2758_v19   ;;  %v2814_v49 = vld [vmem:[%s5060_s30 + $0xd8] sm:$0xff]   ;;  %v2818_v15 = vld [vmem:[%s5060_s30 + $0xe0] sm:$0xff]  }
 0x3b0   : > { %2763 = vst [vmem:[%s5761_s29 + $0xb0] sm:$0xff] %v2762_v20   ;;  %2767 = vst [vmem:[%s5761_s29 + $0xb8] sm:$0xff] %v2766_v21   ;;  %v2822_v35 = vld [vmem:[%s5060_s30 + $0xe8] sm:$0xff]   ;;  %v2826_v36 = vld [vmem:[%s5060_s30 + $0xf0] sm:$0xff]  }
 0x3b1   : > { %2771 = vst [vmem:[%s5761_s29 + $0x100] sm:$0xff] %v2770_v62   ;;  %2775 = vst [vmem:[%s5761_s29 + $0x108] sm:$0xff] %v2774_v23   ;;  %v2830_v38 = vld [vmem:[%s5060_s30 + $0xf8] sm:$0xff]  }
 0x3b2   : > { %2779 = vst [vmem:[%s5761_s29 + $0x110] sm:$0xff] %v2778_v26   ;;  %2783 = vst [vmem:[%s5761_s29 + $0x118] sm:$0xff] %v2782_v27  }
 0x3b3   : > { %2787 = vst [vmem:[%s5761_s29 + $0x120] sm:$0xff] %v2786_v56   ;;  %2791 = vst [vmem:[%s5761_s29 + $0x128] sm:$0xff] %v2790_v28  }
 0x3b4   : > { %2795 = vst [vmem:[%s5761_s29 + $0x130] sm:$0xff] %v2794_v30   ;;  %2799 = vst [vmem:[%s5761_s29 + $0x138] sm:$0xff] %v2798_v31  }
 0x3b5   : > { %2803 = vst [vmem:[%s5761_s29 + $0x180] sm:$0xff] %v2802_v34   ;;  %2807 = vst [vmem:[%s5761_s29 + $0x188] sm:$0xff] %v2806_v14  }
 0x3b6   : > { %2811 = vst [vmem:[%s5761_s29 + $0x190] sm:$0xff] %v2810_v54   ;;  %2815 = vst [vmem:[%s5761_s29 + $0x198] sm:$0xff] %v2814_v49  }
 0x3b7   : > { %2819 = vst [vmem:[%s5761_s29 + $0x1a0] sm:$0xff] %v2818_v15   ;;  %2823 = vst [vmem:[%s5761_s29 + $0x1a8] sm:$0xff] %v2822_v35  }
 0x3b8   : > { %2827 = vst [vmem:[%s5761_s29 + $0x1b0] sm:$0xff] %v2826_v36   ;;  %2831 = vst [vmem:[%s5761_s29 + $0x1b8] sm:$0xff] %v2830_v38  }
 0x3b9 PF: > { %2984 = sbr.rel (!%p4785_p6) target bundleno = 974 (0x3ce), region = 130  ;;  %s3683_s30 = sshll.u32 (%p4785_p6), %s4594_s21, 4  ;;  %v3005_v40 = vld [vmem:[%s5075_s9] sm:$0xff] (%p4785_p6)   ;;  %v3009_v42 = vld [vmem:[%s5075_s9 + $0x8] sm:$0xff] (%p4785_p6)   ;;  %v3013_v43 = vld [vmem:[%s5075_s9 + $0x10] sm:$0xff] (%p4785_p6)  }
 0x3ba   : > { %s3684_s12 = sshll.u32 (%p4785_p6), %s4598_s22, 7  ;;  %v3017_v44 = vld [vmem:[%s5075_s9 + $0x18] sm:$0xff] (%p4785_p6)   ;;  %v3021_v32 = vld [vmem:[%s5075_s9 + $0x20] sm:$0xff] (%p4785_p6)   ;;  %v3025_v2 = vld [vmem:[%s5075_s9 + $0x28] sm:$0xff] (%p4785_p6)  }
 0x3bb   : > { %s2987_s8 = sadd.s32 (%p4785_p6), %s3684_s12, %s3683_s30  ;;  %v3029_v45 = vld [vmem:[%s5075_s9 + $0x30] sm:$0xff] (%p4785_p6)   ;;  %v3033_v1 = vld [vmem:[%s5075_s9 + $0x38] sm:$0xff] (%p4785_p6)   ;;  %v3037_v48 = vld [vmem:[%s5075_s9 + $0x40] sm:$0xff] (%p4785_p6)  }
 0x3bc   : > { %s3685_s15 = sshll.u32 (%p4785_p6), %s2987_s8, 2  ;;  %v3041_v51 = vld [vmem:[%s5075_s9 + $0x48] sm:$0xff] (%p4785_p6)   ;;  %v3045_v29 = vld [vmem:[%s5075_s9 + $0x50] sm:$0xff] (%p4785_p6)   ;;  %v3049_v25 = vld [vmem:[%s5075_s9 + $0x58] sm:$0xff] (%p4785_p6)  }
 0x3bd   : > { %s5834_s17 = scalar_lea.vmem (%p4785_p6), %s5920_s5, %s3685_s15  ;;  %v3053_v52 = vld [vmem:[%s5075_s9 + $0x60] sm:$0xff] (%p4785_p6)   ;;  %v3057_v53 = vld [vmem:[%s5075_s9 + $0x68] sm:$0xff] (%p4785_p6)   ;;  %v3061_v57 = vld [vmem:[%s5075_s9 + $0x70] sm:$0xff] (%p4785_p6)  }
 0x3be   : > { %3006 = vst [vmem:[%s5834_s17] sm:$0xff] (%p4785_p6), %v3005_v40   ;;  %3010 = vst [vmem:[%s5834_s17 + $0x8] sm:$0xff] (%p4785_p6), %v3009_v42   ;;  %v3065_v58 = vld [vmem:[%s5075_s9 + $0x78] sm:$0xff] (%p4785_p6)   ;;  %v3069_v22 = vld [vmem:[%s5075_s9 + $0x80] sm:$0xff] (%p4785_p6)  }
 0x3bf   : > { %3014 = vst [vmem:[%s5834_s17 + $0x10] sm:$0xff] (%p4785_p6), %v3013_v43   ;;  %3018 = vst [vmem:[%s5834_s17 + $0x18] sm:$0xff] (%p4785_p6), %v3017_v44   ;;  %v3073_v59 = vld [vmem:[%s5075_s9 + $0x88] sm:$0xff] (%p4785_p6)   ;;  %v3077_v33 = vld [vmem:[%s5075_s9 + $0x90] sm:$0xff] (%p4785_p6)  }
 0x3c0   : > { %3022 = vst [vmem:[%s5834_s17 + $0x20] sm:$0xff] %v3021_v32   ;;  %3026 = vst [vmem:[%s5834_s17 + $0x28] sm:$0xff] %v3025_v2   ;;  %v3081_v11 = vld [vmem:[%s5075_s9 + $0x98] sm:$0xff]   ;;  %v3085_v60 = vld [vmem:[%s5075_s9 + $0xa0] sm:$0xff]  }
 0x3c1   : > { %3030 = vst [vmem:[%s5834_s17 + $0x30] sm:$0xff] %v3029_v45   ;;  %3034 = vst [vmem:[%s5834_s17 + $0x38] sm:$0xff] %v3033_v1   ;;  %v3089_v12 = vld [vmem:[%s5075_s9 + $0xa8] sm:$0xff]   ;;  %v3093_v0 = vld [vmem:[%s5075_s9 + $0xb0] sm:$0xff]  }
 0x3c2   : > { %3038 = vst [vmem:[%s5834_s17 + $0x80] sm:$0xff] %v3037_v48   ;;  %3042 = vst [vmem:[%s5834_s17 + $0x88] sm:$0xff] %v3041_v51   ;;  %v3097_v4 = vld [vmem:[%s5075_s9 + $0xb8] sm:$0xff]   ;;  %v3101_v41 = vld [vmem:[%s5075_s9 + $0xc0] sm:$0xff]  }
 0x3c3   : > { %3046 = vst [vmem:[%s5834_s17 + $0x90] sm:$0xff] %v3045_v29   ;;  %3050 = vst [vmem:[%s5834_s17 + $0x98] sm:$0xff] %v3049_v25   ;;  %v3105_v47 = vld [vmem:[%s5075_s9 + $0xc8] sm:$0xff]   ;;  %v3109_v55 = vld [vmem:[%s5075_s9 + $0xd0] sm:$0xff]  }
 0x3c4   : > { %3054 = vst [vmem:[%s5834_s17 + $0xa0] sm:$0xff] %v3053_v52   ;;  %3058 = vst [vmem:[%s5834_s17 + $0xa8] sm:$0xff] %v3057_v53   ;;  %v3113_v37 = vld [vmem:[%s5075_s9 + $0xd8] sm:$0xff]   ;;  %v3117_v50 = vld [vmem:[%s5075_s9 + $0xe0] sm:$0xff]  }
 0x3c5   : > { %3062 = vst [vmem:[%s5834_s17 + $0xb0] sm:$0xff] %v3061_v57   ;;  %3066 = vst [vmem:[%s5834_s17 + $0xb8] sm:$0xff] %v3065_v58   ;;  %v3121_v10 = vld [vmem:[%s5075_s9 + $0xe8] sm:$0xff]   ;;  %v3125_v3 = vld [vmem:[%s5075_s9 + $0xf0] sm:$0xff]  }
 0x3c6   : > { %3070 = vst [vmem:[%s5834_s17 + $0x100] sm:$0xff] %v3069_v22   ;;  %3074 = vst [vmem:[%s5834_s17 + $0x108] sm:$0xff] %v3073_v59   ;;  %v3129_v13 = vld [vmem:[%s5075_s9 + $0xf8] sm:$0xff]  }
 0x3c7   : > { %3078 = vst [vmem:[%s5834_s17 + $0x110] sm:$0xff] %v3077_v33   ;;  %3082 = vst [vmem:[%s5834_s17 + $0x118] sm:$0xff] %v3081_v11  }
 0x3c8   : > { %3086 = vst [vmem:[%s5834_s17 + $0x120] sm:$0xff] %v3085_v60   ;;  %3090 = vst [vmem:[%s5834_s17 + $0x128] sm:$0xff] %v3089_v12  }
 0x3c9   : > { %3094 = vst [vmem:[%s5834_s17 + $0x130] sm:$0xff] %v3093_v0   ;;  %3098 = vst [vmem:[%s5834_s17 + $0x138] sm:$0xff] %v3097_v4  }
 0x3ca   : > { %3102 = vst [vmem:[%s5834_s17 + $0x180] sm:$0xff] %v3101_v41   ;;  %3106 = vst [vmem:[%s5834_s17 + $0x188] sm:$0xff] %v3105_v47  }
 0x3cb   : > { %3110 = vst [vmem:[%s5834_s17 + $0x190] sm:$0xff] %v3109_v55   ;;  %3114 = vst [vmem:[%s5834_s17 + $0x198] sm:$0xff] %v3113_v37  }
 0x3cc   : > { %3118 = vst [vmem:[%s5834_s17 + $0x1a0] sm:$0xff] %v3117_v50   ;;  %3122 = vst [vmem:[%s5834_s17 + $0x1a8] sm:$0xff] %v3121_v10  }
 0x3cd   : > { %3126 = vst [vmem:[%s5834_s17 + $0x1b0] sm:$0xff] %v3125_v3   ;;  %3130 = vst [vmem:[%s5834_s17 + $0x1b8] sm:$0xff] %v3129_v13  }
 0x3ce PF: > { %s20_s25 = sadd.s32 1, %s4610_s25   ;;  %s5947_s21 = sld [smem:[#allocation12_spill]] }
 0x3cf   : > { %p17_p6 = scmp.ge.s32.totalorder %s20_s25, 6   ;;  %s5948_s23 = sld [smem:[#allocation13_spill]] }
 0x3d0   : > { %s5949_s16 = sld [smem:[#allocation14_spill]]  ;;  %s5950_s18 = smov %s4586_s19 }
 0x3d1   : > { %s5951_s19 = smov %s4590_s20  ;;  %s5952_s20 = smov %s4802_s11 }
 0x3d2   : > { %s5953_s22 = smov %s4606_s24  ;;  %19 = sbr.rel (!%p17_p6) target bundleno = 9 (0x9), region = 228 }
 0x3d6   : > { %s5954_s24 = smov %s5949_s16 }
 0x3d9   :  { %3307 = vsyncpa [#allocation3], 1 }
 0x3da   :  { %3309 = vsyncpa [#allocation3 + $0x1], 1 }
 0x3db   :  { %3310 = vsyncpa [#allocation5], 1 }

</bundles_post_ra>
